<compile_context>
chip_gen: v7x
topology: tpu7x:2x2x1
jax: 0.10.0
libtpu: 0.0.40
codegen_flags: <defaults>
</compile_context>

<pallas_src>
import jax
import jax.numpy as jnp
from jax.experimental import pallas as pl
from jax.experimental.pallas import tpu as pltpu


# ------------------------------ kernel helpers -------------------------------

def _conv3x3_rows(n_rows, read_tap, w_ref, bias, write_row, pre_relu6):
    """Row-by-row 3x3 conv.

    For each output row y, accumulates the 9 taps as (W, Cin) @ (Cin, Cout)
    MXU matmuls (f32 accumulation) and hands `acc + bias` to write_row.
    """
    def body(y, carry):
        acc = None
        for ky in range(3):
            for kx in range(3):
                tap = read_tap(y, ky, kx)
                if pre_relu6:
                    tap = jnp.clip(tap, 0.0, 6.0)
                w = w_ref[3 * ky + kx]                       # (Cin, Cout)
                part = jnp.dot(tap.astype(w.dtype), w,
                               preferred_element_type=jnp.float32)
                acc = part if acc is None else acc + part
        write_row(y, acc + bias)
        return carry

    jax.lax.fori_loop(0, n_rows, body, 0)


def _stage_downsample(xph_ref, w_ds_ref, b_ds_ref, xpad_ref, out_shape):
    """3x3 / stride-2 / valid conv, written into the interior of xpad (zero border)."""
    Ho, Wo, _ = out_shape
    Hh = xph_ref.shape[0] // 4                               # rows per phase
    xpad_ref[...] = jnp.zeros_like(xpad_ref)
    bias = b_ds_ref[...].astype(jnp.float32)                 # (1, Cmid)

    def read_tap(y, ky, kx):
        # x[2y+ky, 2x+kx] == phase(ky&1, kx&1)[y + ky//2, x + kx//2]
        p = 2 * (ky % 2) + (kx % 2)
        return xph_ref[p * Hh + (ky // 2) + y, pl.ds(kx // 2, Wo), :]

    def write_row(y, row):
        xpad_ref[y + 1, pl.ds(1, Wo), :] = row

    _conv3x3_rows(Ho, read_tap, w_ds_ref, bias, write_row, pre_relu6=False)


def _stage_copy_in(x_ref, xpad_ref, out_shape):
    """stride==1 path: copy x into the interior of xpad (zero border)."""
    Ho, Wo, _ = out_shape
    xpad_ref[...] = jnp.zeros_like(xpad_ref)

    def body(y, carry):
        xpad_ref[y + 1, pl.ds(1, Wo), :] = x_ref[y].astype(jnp.float32)
        return carry

    jax.lax.fori_loop(0, Ho, body, 0)


def _stage_branch(w1_ref, b1_ref, w2_ref, b2_ref, o_ref, xpad_ref, hpad_ref):
    """h = relu6(conv1(relu6(x)) + b1);  out = relu6(conv2(h) + b2 + x)."""
    Ho, Wo, _ = o_ref.shape
    hpad_ref[...] = jnp.zeros_like(hpad_ref)

    # Stage B: conv1 on relu6(x).  relu6(0) == 0, so applying relu6 to the
    # zero-padded tile is equivalent to padding relu6(x) with zeros.
    b1 = b1_ref[...].astype(jnp.float32)

    def read_x(y, ky, kx):
        return xpad_ref[y + ky, pl.ds(kx, Wo), :]

    def write_h(y, row):
        hpad_ref[y + 1, pl.ds(1, Wo), :] = jnp.clip(row, 0.0, 6.0)

    _conv3x3_rows(Ho, read_x, w1_ref, b1, write_h, pre_relu6=True)

    # Stage C: conv2(h) + bias + residual x, final relu6, write output.
    b2 = b2_ref[...].astype(jnp.float32)

    def read_h(y, ky, kx):
        return hpad_ref[y + ky, pl.ds(kx, Wo), :]

    def write_o(y, row):
        res = xpad_ref[y + 1, pl.ds(1, Wo), :]
        # TODO(synk): for Cout < 128 these row stores are lane-masked; pad the
        # channel dim to 128 inside the kernel for a fully lane-dense epilogue.
        o_ref[y] = jnp.clip(row + res, 0.0, 6.0).astype(o_ref.dtype)

    _conv3x3_rows(Ho, read_h, w2_ref, b2, write_o, pre_relu6=False)


def _make_lffd_kernel(downsample):
    if downsample:
        def kernel(xph_ref, w_ds_ref, b_ds_ref, w1_ref, b1_ref, w2_ref, b2_ref,
                   o_ref, xpad_ref, hpad_ref):
            _stage_downsample(xph_ref, w_ds_ref, b_ds_ref, xpad_ref, o_ref.shape)
            _stage_branch(w1_ref, b1_ref, w2_ref, b2_ref, o_ref, xpad_ref, hpad_ref)
    else:
        def kernel(x_ref, w1_ref, b1_ref, w2_ref, b2_ref,
                   o_ref, xpad_ref, hpad_ref):
            _stage_copy_in(x_ref, xpad_ref, o_ref.shape)
            _stage_branch(w1_ref, b1_ref, w2_ref, b2_ref, o_ref, xpad_ref, hpad_ref)
    return kernel


# -------------------------------- JAX wrapper --------------------------------

def _oihw_to_taps(w_oihw):
    """PyTorch OIHW (Cout, Cin, 3, 3) -> (9, Cin, Cout), tap index t = 3*ky + kx."""
    cout, cin = int(w_oihw.shape[0]), int(w_oihw.shape[1])
    return jnp.transpose(w_oihw, (2, 3, 1, 0)).reshape(9, cin, cout)


def _const_spec(arr):
    """Whole-array block that is grid-invariant (loaded into VMEM once)."""
    shape = tuple(int(d) for d in arr.shape)
    return pl.BlockSpec(shape, lambda n, _z=(0,) * len(shape): _z)


def lffd_block_forward(x_nchw, params, stride):
    """Pallas TPU implementation of LFFDBlock.forward (NCHW in / NCHW out)."""
    if stride not in (1, 2):
        raise ValueError("stride must be 1 or 2")

    x = jnp.transpose(x_nchw, (0, 2, 3, 1))                  # NCHW -> NHWC
    N, H, W, cin = x.shape
    cmid = int(params["w1"].shape[0])
    out_dtype = x.dtype

    w1 = _oihw_to_taps(params["w1"])                         # (9, cmid, cmid)
    b1 = params["b1"].reshape(1, cmid)
    w2 = _oihw_to_taps(params["w2"])
    b2 = params["b2"].reshape(1, cmid)

    if stride == 2:
        Ho, Wo = (H - 3) // 2 + 1, (W - 3) // 2 + 1
        # 2x2 spatial phase decomposition (cheap XLA rearrangement): the kernel's
        # stride-2 taps become contiguous unstrided slices of one of 4 phases.
        He, We = H + (H % 2), W + (W % 2)                    # pad to even (never read)
        xp = jnp.pad(x, ((0, 0), (0, He - H), (0, We - W), (0, 0)))
        Hh, Wh = He // 2, We // 2
        xph = xp.reshape(N, Hh, 2, Wh, 2, cin)
        xph = jnp.transpose(xph, (0, 2, 4, 1, 3, 5)).reshape(N, 4 * Hh, Wh, cin)

        w_ds = _oihw_to_taps(params["w_ds"])                 # (9, cin, cmid)
        b_ds = params["b_ds"].reshape(1, cmid)

        operands = (xph, w_ds, b_ds, w1, b1, w2, b2)
        in_specs = [pl.BlockSpec((None, 4 * Hh, Wh, cin), lambda n: (n, 0, 0, 0))]
        in_specs += [_const_spec(a) for a in operands[1:]]
        kernel = _make_lffd_kernel(downsample=True)
        ds_macs = cin * cmid
    else:
        if cin != cmid:
            raise ValueError("stride=1 LFFDBlock requires in_channels == out_channels")
        Ho, Wo = H, W
        operands = (x, w1, b1, w2, b2)
        in_specs = [pl.BlockSpec((None, H, W, cin), lambda n: (n, 0, 0, 0))]
        in_specs += [_const_spec(a) for a in operands[1:]]
        kernel = _make_lffd_kernel(downsample=False)
        ds_macs = 0

    macs = N * Ho * Wo * 9 * (2 * cmid * cmid + ds_macs)
    bytes_accessed = N * Ho * Wo * cmid * jnp.dtype(out_dtype).itemsize
    bytes_accessed += sum(int(a.size) * a.dtype.itemsize for a in operands)

    out_nhwc = pl.pallas_call(
        kernel,
        out_shape=jax.ShapeDtypeStruct((N, Ho, Wo, cmid), out_dtype),
        grid_spec=pltpu.PrefetchScalarGridSpec(
            num_scalar_prefetch=0,
            grid=(N,),
            in_specs=in_specs,
            out_specs=pl.BlockSpec((None, Ho, Wo, cmid), lambda n: (n, 0, 0, 0)),
            scratch_shapes=[
                pltpu.VMEM((Ho + 2, Wo + 2, cmid), jnp.float32),  # padded x / residual
                pltpu.VMEM((Ho + 2, Wo + 2, cmid), jnp.float32),  # padded h
            ]),
        compiler_params=pltpu.CompilerParams(
            dimension_semantics=("parallel",),
            vmem_limit_bytes=64 * 1024 * 1024),
        cost_estimate=pl.CostEstimate(flops=2 * macs, transcendentals=0,
                                      bytes_accessed=int(bytes_accessed)),
    )(*operands)

    return jnp.transpose(out_nhwc, (0, 3, 1, 2))             # NHWC -> NCHW


# ----------------------------- pure-JAX reference -----------------------------

def _ref_forward(x_nchw, params, stride):
    x = jnp.transpose(x_nchw, (0, 2, 3, 1))

    def conv(v, w_oihw, b, s, pad):
        w = jnp.transpose(w_oihw, (2, 3, 1, 0))              # HWIO
        y = jax.lax.conv_general_dilated(
            v, w, (s, s), [(pad, pad), (pad, pad)],
            dimension_numbers=("NHWC", "HWIO", "NHWC"))
        return y + b

    relu6 = lambda v: jnp.clip(v, 0.0, 6.0)
    if stride == 2:
        x = conv(x, params["w_ds"], params["b_ds"], 2, 0)
    h = relu6(conv(relu6(x), params["w1"], params["b1"], 1, 1))
    out = conv(h, params["w2"], params["b2"], 1, 1)
    return jnp.transpose(relu6(out + x), (0, 3, 1, 2))


# ------------------------------------ main ------------------------------------

if __name__ == "__main__":
    key = jax.random.PRNGKey(0)
    ks = jax.random.split(key, 8)

    # --- stride=2 (downsampling) block: LFFDBlock(in=4, out=8, stride=2) ---
    N, Cin, Cout, H, W = 2, 4, 8, 16, 16
    params2 = {
        "w_ds": 0.1 * jax.random.normal(ks[0], (Cout, Cin, 3, 3), jnp.float32),
        "b_ds": 0.1 * jax.random.normal(ks[1], (Cout,), jnp.float32),
        "w1":   0.1 * jax.random.normal(ks[2], (Cout, Cout, 3, 3), jnp.float32),
        "b1":   0.1 * jax.random.normal(ks[3], (Cout,), jnp.float32),
        "w2":   0.1 * jax.random.normal(ks[4], (Cout, Cout, 3, 3), jnp.float32),
        "b2":   0.1 * jax.random.normal(ks[5], (Cout,), jnp.float32),
    }
    x2 = jax.random.normal(ks[6], (N, Cin, H, W), jnp.float32)   # NCHW, like PyTorch

    out2 = jax.block_until_ready(lffd_block_forward(x2, params2, stride=2))
    ref2 = jax.block_until_ready(_ref_forward(x2, params2, 2))
    assert out2.shape == ref2.shape, (out2.shape, ref2.shape)
    assert jnp.allclose(out2, ref2, atol=1e-4, rtol=1e-4), \
        float(jnp.max(jnp.abs(out2 - ref2)))

    # --- stride=1 (pure residual) block: LFFDBlock(in=8, out=8, stride=1) ---
    params1 = {k: params2[k] for k in ("w1", "b1", "w2", "b2")}
    x1 = jax.random.normal(ks[7], (N, Cout, H, W), jnp.float32)

    out1 = jax.block_until_ready(lffd_block_forward(x1, params1, stride=1))
    ref1 = jax.block_until_ready(_ref_forward(x1, params1, 1))
    assert out1.shape == ref1.shape, (out1.shape, ref1.shape)
    assert jnp.allclose(out1, ref1, atol=1e-4, rtol=1e-4), \
        float(jnp.max(jnp.abs(out1 - ref1)))

    print("KERNEL_OK")
</pallas_src>

<mosaic_0001>
module attributes {stable_mosaic.version = 11 : i64} {
  func.func @kernel(%arg0: i32, %arg1: memref<1x32x8x4xf32, #tpu.memory_space<vmem>>, %arg2: memref<9x4x8xf32, #tpu.memory_space<vmem>>, %arg3: memref<1x8xf32, #tpu.memory_space<vmem>>, %arg4: memref<9x8x8xf32, #tpu.memory_space<vmem>>, %arg5: memref<1x8xf32, #tpu.memory_space<vmem>>, %arg6: memref<9x8x8xf32, #tpu.memory_space<vmem>>, %arg7: memref<1x8xf32, #tpu.memory_space<vmem>>, %arg8: memref<1x7x7x8xf32, #tpu.memory_space<vmem>>, %arg9: memref<9x9x8xf32, #tpu.memory_space<vmem>>, %arg10: memref<9x9x8xf32, #tpu.memory_space<vmem>>) attributes {dimension_semantics = [#tpu.dimension_semantics<parallel>], iteration_bounds = array<i64: 2>, scalar_prefetch = 0 : i64, scratch_operands = 2 : i64, tpu.core_type = #tpu.core_type<tc>, window_params = [{transform_indices = @transform_0, window_bounds = array<i64: 1, 32, 8, 4>}, {pipeline_mode = #tpu.pipeline_mode<synchronous>, transform_indices = @transform_1, window_bounds = array<i64: 9, 4, 8>}, {pipeline_mode = #tpu.pipeline_mode<synchronous>, transform_indices = @transform_2, window_bounds = array<i64: 1, 8>}, {pipeline_mode = #tpu.pipeline_mode<synchronous>, transform_indices = @transform_3, window_bounds = array<i64: 9, 8, 8>}, {pipeline_mode = #tpu.pipeline_mode<synchronous>, transform_indices = @transform_4, window_bounds = array<i64: 1, 8>}, {pipeline_mode = #tpu.pipeline_mode<synchronous>, transform_indices = @transform_5, window_bounds = array<i64: 9, 8, 8>}, {pipeline_mode = #tpu.pipeline_mode<synchronous>, transform_indices = @transform_6, window_bounds = array<i64: 1, 8>}, {transform_indices = @transform_7, window_bounds = array<i64: 1, 7, 7, 8>}]} {
    %cst = arith.constant 0.000000e+00 : f32
    %0 = vector.broadcast %cst : f32 to vector<9x9x8xf32>
    %c0 = arith.constant 0 : index
    %c0_0 = arith.constant 0 : index
    %c0_1 = arith.constant 0 : index
    %1 = vector.load %arg9[%c0, %c0_0, %c0_1] : memref<9x9x8xf32, #tpu.memory_space<vmem>>, vector<9x9x8xf32>
    tpu.vector_store %arg9[%c0, %c0_0, %c0_1], %0 {strides = array<i32>} : memref<9x9x8xf32, #tpu.memory_space<vmem>>, vector<9x9x8xf32>,
    %c0_2 = arith.constant 0 : index
    %c0_3 = arith.constant 0 : index
    %2 = vector.load %arg3[%c0_2, %c0_3] : memref<1x8xf32, #tpu.memory_space<vmem>>, vector<1x8xf32>
    %c0_i32 = arith.constant 0 : i32
    %c7_i32 = arith.constant 7 : i32
    %3 = arith.addi %c0_i32, %c7_i32 : i32
    %c1_i32 = arith.constant 1 : i32
    scf.for %arg11 = %c0_i32 to %3 step %c1_i32  : i32 {
      %c0_i32_21 = arith.constant 0 : i32
      %10 = arith.addi %c0_i32_21, %arg11 : i32
      %c0_22 = arith.constant 0 : index
      %11 = arith.index_cast %10 : i32 to index
      %c0_23 = arith.constant 0 : index
      %c0_24 = arith.constant 0 : index
      %12 = vector.load %arg1[%c0_22, %11, %c0_23, %c0_24] : memref<1x32x8x4xf32, #tpu.memory_space<vmem>>, vector<1x1x7x4xf32>
      %13 = vector.shape_cast %12 : vector<1x1x7x4xf32> to vector<7x4xf32>
      %c0_25 = arith.constant 0 : index
      %c0_26 = arith.constant 0 : index
      %c0_27 = arith.constant 0 : index
      %14 = vector.load %arg2[%c0_25, %c0_26, %c0_27] : memref<9x4x8xf32, #tpu.memory_space<vmem>>, vector<1x4x8xf32>
      %15 = vector.shape_cast %14 : vector<1x4x8xf32> to vector<4x8xf32>
      %cst_28 = arith.constant dense<0.000000e+00> : vector<7x8xf32>
      %16 = tpu.matmul %13, %15, %cst_28 {dimension_numbers = #tpu.dot_dimension_numbers<[1], [0], [0], [1], [0, 0, 1, 1], [], []>} : vector<7x4xf32>, vector<4x8xf32>, vector<7x8xf32> -> vector<7x8xf32>
      %c8_i32 = arith.constant 8 : i32
      %17 = arith.addi %c8_i32, %arg11 : i32
      %c0_29 = arith.constant 0 : index
      %18 = arith.index_cast %17 : i32 to index
      %c0_30 = arith.constant 0 : index
      %c0_31 = arith.constant 0 : index
      %19 = vector.load %arg1[%c0_29, %18, %c0_30, %c0_31] : memref<1x32x8x4xf32, #tpu.memory_space<vmem>>, vector<1x1x7x4xf32>
      %20 = vector.shape_cast %19 : vector<1x1x7x4xf32> to vector<7x4xf32>
      %c1 = arith.constant 1 : index
      %c0_32 = arith.constant 0 : index
      %c0_33 = arith.constant 0 : index
      %21 = vector.load %arg2[%c1, %c0_32, %c0_33] : memref<9x4x8xf32, #tpu.memory_space<vmem>>, vector<1x4x8xf32>
      %22 = vector.shape_cast %21 : vector<1x4x8xf32> to vector<4x8xf32>
      %cst_34 = arith.constant dense<0.000000e+00> : vector<7x8xf32>
      %23 = tpu.matmul %20, %22, %cst_34 {dimension_numbers = #tpu.dot_dimension_numbers<[1], [0], [0], [1], [0, 0, 1, 1], [], []>} : vector<7x4xf32>, vector<4x8xf32>, vector<7x8xf32> -> vector<7x8xf32>
      %24 = arith.addf %16, %23 : vector<7x8xf32>
      %c0_i32_35 = arith.constant 0 : i32
      %25 = arith.addi %c0_i32_35, %arg11 : i32
      %c0_36 = arith.constant 0 : index
      %26 = arith.index_cast %25 : i32 to index
      %c1_37 = arith.constant 1 : index
      %c0_38 = arith.constant 0 : index
      %27 = vector.load %arg1[%c0_36, %26, %c1_37, %c0_38] : memref<1x32x8x4xf32, #tpu.memory_space<vmem>>, vector<1x1x7x4xf32>
      %28 = vector.shape_cast %27 : vector<1x1x7x4xf32> to vector<7x4xf32>
      %c2 = arith.constant 2 : index
      %c0_39 = arith.constant 0 : index
      %c0_40 = arith.constant 0 : index
      %29 = vector.load %arg2[%c2, %c0_39, %c0_40] : memref<9x4x8xf32, #tpu.memory_space<vmem>>, vector<1x4x8xf32>
      %30 = vector.shape_cast %29 : vector<1x4x8xf32> to vector<4x8xf32>
      %cst_41 = arith.constant dense<0.000000e+00> : vector<7x8xf32>
      %31 = tpu.matmul %28, %30, %cst_41 {dimension_numbers = #tpu.dot_dimension_numbers<[1], [0], [0], [1], [0, 0, 1, 1], [], []>} : vector<7x4xf32>, vector<4x8xf32>, vector<7x8xf32> -> vector<7x8xf32>
      %32 = arith.addf %24, %31 : vector<7x8xf32>
      %c16_i32 = arith.constant 16 : i32
      %33 = arith.addi %c16_i32, %arg11 : i32
      %c0_42 = arith.constant 0 : index
      %34 = arith.index_cast %33 : i32 to index
      %c0_43 = arith.constant 0 : index
      %c0_44 = arith.constant 0 : index
      %35 = vector.load %arg1[%c0_42, %34, %c0_43, %c0_44] : memref<1x32x8x4xf32, #tpu.memory_space<vmem>>, vector<1x1x7x4xf32>
      %36 = vector.shape_cast %35 : vector<1x1x7x4xf32> to vector<7x4xf32>
      %c3 = arith.constant 3 : index
      %c0_45 = arith.constant 0 : index
      %c0_46 = arith.constant 0 : index
      %37 = vector.load %arg2[%c3, %c0_45, %c0_46] : memref<9x4x8xf32, #tpu.memory_space<vmem>>, vector<1x4x8xf32>
      %38 = vector.shape_cast %37 : vector<1x4x8xf32> to vector<4x8xf32>
      %cst_47 = arith.constant dense<0.000000e+00> : vector<7x8xf32>
      %39 = tpu.matmul %36, %38, %cst_47 {dimension_numbers = #tpu.dot_dimension_numbers<[1], [0], [0], [1], [0, 0, 1, 1], [], []>} : vector<7x4xf32>, vector<4x8xf32>, vector<7x8xf32> -> vector<7x8xf32>
      %40 = arith.addf %32, %39 : vector<7x8xf32>
      %c24_i32 = arith.constant 24 : i32
      %41 = arith.addi %c24_i32, %arg11 : i32
      %c0_48 = arith.constant 0 : index
      %42 = arith.index_cast %41 : i32 to index
      %c0_49 = arith.constant 0 : index
      %c0_50 = arith.constant 0 : index
      %43 = vector.load %arg1[%c0_48, %42, %c0_49, %c0_50] : memref<1x32x8x4xf32, #tpu.memory_space<vmem>>, vector<1x1x7x4xf32>
      %44 = vector.shape_cast %43 : vector<1x1x7x4xf32> to vector<7x4xf32>
      %c4 = arith.constant 4 : index
      %c0_51 = arith.constant 0 : index
      %c0_52 = arith.constant 0 : index
      %45 = vector.load %arg2[%c4, %c0_51, %c0_52] : memref<9x4x8xf32, #tpu.memory_space<vmem>>, vector<1x4x8xf32>
      %46 = vector.shape_cast %45 : vector<1x4x8xf32> to vector<4x8xf32>
      %cst_53 = arith.constant dense<0.000000e+00> : vector<7x8xf32>
      %47 = tpu.matmul %44, %46, %cst_53 {dimension_numbers = #tpu.dot_dimension_numbers<[1], [0], [0], [1], [0, 0, 1, 1], [], []>} : vector<7x4xf32>, vector<4x8xf32>, vector<7x8xf32> -> vector<7x8xf32>
      %48 = arith.addf %40, %47 : vector<7x8xf32>
      %c16_i32_54 = arith.constant 16 : i32
      %49 = arith.addi %c16_i32_54, %arg11 : i32
      %c0_55 = arith.constant 0 : index
      %50 = arith.index_cast %49 : i32 to index
      %c1_56 = arith.constant 1 : index
      %c0_57 = arith.constant 0 : index
      %51 = vector.load %arg1[%c0_55, %50, %c1_56, %c0_57] : memref<1x32x8x4xf32, #tpu.memory_space<vmem>>, vector<1x1x7x4xf32>
      %52 = vector.shape_cast %51 : vector<1x1x7x4xf32> to vector<7x4xf32>
      %c5 = arith.constant 5 : index
      %c0_58 = arith.constant 0 : index
      %c0_59 = arith.constant 0 : index
      %53 = vector.load %arg2[%c5, %c0_58, %c0_59] : memref<9x4x8xf32, #tpu.memory_space<vmem>>, vector<1x4x8xf32>
      %54 = vector.shape_cast %53 : vector<1x4x8xf32> to vector<4x8xf32>
      %cst_60 = arith.constant dense<0.000000e+00> : vector<7x8xf32>
      %55 = tpu.matmul %52, %54, %cst_60 {dimension_numbers = #tpu.dot_dimension_numbers<[1], [0], [0], [1], [0, 0, 1, 1], [], []>} : vector<7x4xf32>, vector<4x8xf32>, vector<7x8xf32> -> vector<7x8xf32>
      %56 = arith.addf %48, %55 : vector<7x8xf32>
      %c1_i32_61 = arith.constant 1 : i32
      %57 = arith.addi %c1_i32_61, %arg11 : i32
      %c0_62 = arith.constant 0 : index
      %58 = arith.index_cast %57 : i32 to index
      %c0_63 = arith.constant 0 : index
      %c0_64 = arith.constant 0 : index
      %59 = vector.load %arg1[%c0_62, %58, %c0_63, %c0_64] : memref<1x32x8x4xf32, #tpu.memory_space<vmem>>, vector<1x1x7x4xf32>
      %60 = vector.shape_cast %59 : vector<1x1x7x4xf32> to vector<7x4xf32>
      %c6 = arith.constant 6 : index
      %c0_65 = arith.constant 0 : index
      %c0_66 = arith.constant 0 : index
      %61 = vector.load %arg2[%c6, %c0_65, %c0_66] : memref<9x4x8xf32, #tpu.memory_space<vmem>>, vector<1x4x8xf32>
      %62 = vector.shape_cast %61 : vector<1x4x8xf32> to vector<4x8xf32>
      %cst_67 = arith.constant dense<0.000000e+00> : vector<7x8xf32>
      %63 = tpu.matmul %60, %62, %cst_67 {dimension_numbers = #tpu.dot_dimension_numbers<[1], [0], [0], [1], [0, 0, 1, 1], [], []>} : vector<7x4xf32>, vector<4x8xf32>, vector<7x8xf32> -> vector<7x8xf32>
      %64 = arith.addf %56, %63 : vector<7x8xf32>
      %c9_i32 = arith.constant 9 : i32
      %65 = arith.addi %c9_i32, %arg11 : i32
      %c0_68 = arith.constant 0 : index
      %66 = arith.index_cast %65 : i32 to index
      %c0_69 = arith.constant 0 : index
      %c0_70 = arith.constant 0 : index
      %67 = vector.load %arg1[%c0_68, %66, %c0_69, %c0_70] : memref<1x32x8x4xf32, #tpu.memory_space<vmem>>, vector<1x1x7x4xf32>
      %68 = vector.shape_cast %67 : vector<1x1x7x4xf32> to vector<7x4xf32>
      %c7 = arith.constant 7 : index
      %c0_71 = arith.constant 0 : index
      %c0_72 = arith.constant 0 : index
      %69 = vector.load %arg2[%c7, %c0_71, %c0_72] : memref<9x4x8xf32, #tpu.memory_space<vmem>>, vector<1x4x8xf32>
      %70 = vector.shape_cast %69 : vector<1x4x8xf32> to vector<4x8xf32>
      %cst_73 = arith.constant dense<0.000000e+00> : vector<7x8xf32>
      %71 = tpu.matmul %68, %70, %cst_73 {dimension_numbers = #tpu.dot_dimension_numbers<[1], [0], [0], [1], [0, 0, 1, 1], [], []>} : vector<7x4xf32>, vector<4x8xf32>, vector<7x8xf32> -> vector<7x8xf32>
      %72 = arith.addf %64, %71 : vector<7x8xf32>
      %c1_i32_74 = arith.constant 1 : i32
      %73 = arith.addi %c1_i32_74, %arg11 : i32
      %c0_75 = arith.constant 0 : index
      %74 = arith.index_cast %73 : i32 to index
      %c1_76 = arith.constant 1 : index
      %c0_77 = arith.constant 0 : index
      %75 = vector.load %arg1[%c0_75, %74, %c1_76, %c0_77] : memref<1x32x8x4xf32, #tpu.memory_space<vmem>>, vector<1x1x7x4xf32>
      %76 = vector.shape_cast %75 : vector<1x1x7x4xf32> to vector<7x4xf32>
      %c8 = arith.constant 8 : index
      %c0_78 = arith.constant 0 : index
      %c0_79 = arith.constant 0 : index
      %77 = vector.load %arg2[%c8, %c0_78, %c0_79] : memref<9x4x8xf32, #tpu.memory_space<vmem>>, vector<1x4x8xf32>
      %78 = vector.shape_cast %77 : vector<1x4x8xf32> to vector<4x8xf32>
      %cst_80 = arith.constant dense<0.000000e+00> : vector<7x8xf32>
      %79 = tpu.matmul %76, %78, %cst_80 {dimension_numbers = #tpu.dot_dimension_numbers<[1], [0], [0], [1], [0, 0, 1, 1], [], []>} : vector<7x4xf32>, vector<4x8xf32>, vector<7x8xf32> -> vector<7x8xf32>
      %80 = arith.addf %72, %79 : vector<7x8xf32>
      %81 = vector.broadcast %2 : vector<1x8xf32> to vector<7x8xf32>
      %82 = arith.addf %80, %81 : vector<7x8xf32>
      %c1_i32_81 = arith.constant 1 : i32
      %83 = arith.addi %arg11, %c1_i32_81 : i32
      %84 = arith.index_cast %83 : i32 to index
      %c1_82 = arith.constant 1 : index
      %c0_83 = arith.constant 0 : index
      %85 = vector.load %arg9[%84, %c1_82, %c0_83] : memref<9x9x8xf32, #tpu.memory_space<vmem>>, vector<1x7x8xf32>
      %86 = vector.shape_cast %85 : vector<1x7x8xf32> to vector<7x8xf32>
      %87 = vector.shape_cast %82 : vector<7x8xf32> to vector<1x7x8xf32>
      tpu.vector_store %arg9[%84, %c1_82, %c0_83], %87 {strides = array<i32>} : memref<9x9x8xf32, #tpu.memory_space<vmem>>, vector<1x7x8xf32>,
    }
    %c7_i32_4 = arith.constant 7 : i32
    %cst_5 = arith.constant 0.000000e+00 : f32
    %4 = vector.broadcast %cst_5 : f32 to vector<9x9x8xf32>
    %c0_6 = arith.constant 0 : index
    %c0_7 = arith.constant 0 : index
    %c0_8 = arith.constant 0 : index
    %5 = vector.load %arg10[%c0_6, %c0_7, %c0_8] : memref<9x9x8xf32, #tpu.memory_space<vmem>>, vector<9x9x8xf32>
    tpu.vector_store %arg10[%c0_6, %c0_7, %c0_8], %4 {strides = array<i32>} : memref<9x9x8xf32, #tpu.memory_space<vmem>>, vector<9x9x8xf32>,
    %c0_9 = arith.constant 0 : index
    %c0_10 = arith.constant 0 : index
    %6 = vector.load %arg5[%c0_9, %c0_10] : memref<1x8xf32, #tpu.memory_space<vmem>>, vector<1x8xf32>
    %c0_i32_11 = arith.constant 0 : i32
    %c7_i32_12 = arith.constant 7 : i32
    %7 = arith.addi %c0_i32_11, %c7_i32_12 : i32
    %c1_i32_13 = arith.constant 1 : i32
    scf.for %arg11 = %c0_i32_11 to %7 step %c1_i32_13  : i32 {
      %c0_i32_21 = arith.constant 0 : i32
      %10 = arith.addi %arg11, %c0_i32_21 : i32
      %11 = arith.index_cast %10 : i32 to index
      %c0_22 = arith.constant 0 : index
      %c0_23 = arith.constant 0 : index
      %12 = vector.load %arg9[%11, %c0_22, %c0_23] : memref<9x9x8xf32, #tpu.memory_space<vmem>>, vector<1x7x8xf32>
      %13 = vector.shape_cast %12 : vector<1x7x8xf32> to vector<7x8xf32>
      %cst_24 = arith.constant 0.000000e+00 : f32
      %cst_25 = arith.constant 6.000000e+00 : f32
      %14 = vector.broadcast %cst_24 : f32 to vector<7x8xf32>
      %15 = arith.maximumf %14, %13 : vector<7x8xf32>
      %16 = vector.broadcast %cst_25 : f32 to vector<7x8xf32>
      %17 = arith.minimumf %16, %15 : vector<7x8xf32>
      %c0_26 = arith.constant 0 : index
      %c0_27 = arith.constant 0 : index
      %c0_28 = arith.constant 0 : index
      %18 = vector.load %arg4[%c0_26, %c0_27, %c0_28] : memref<9x8x8xf32, #tpu.memory_space<vmem>>, vector<1x8x8xf32>
      %19 = vector.shape_cast %18 : vector<1x8x8xf32> to vector<8x8xf32>
      %cst_29 = arith.constant dense<0.000000e+00> : vector<7x8xf32>
      %20 = tpu.matmul %17, %19, %cst_29 {dimension_numbers = #tpu.dot_dimension_numbers<[1], [0], [0], [1], [0, 0, 1, 1], [], []>} : vector<7x8xf32>, vector<8x8xf32>, vector<7x8xf32> -> vector<7x8xf32>
      %c0_i32_30 = arith.constant 0 : i32
      %21 = arith.addi %arg11, %c0_i32_30 : i32
      %22 = arith.index_cast %21 : i32 to index
      %c1 = arith.constant 1 : index
      %c0_31 = arith.constant 0 : index
      %23 = vector.load %arg9[%22, %c1, %c0_31] : memref<9x9x8xf32, #tpu.memory_space<vmem>>, vector<1x7x8xf32>
      %24 = vector.shape_cast %23 : vector<1x7x8xf32> to vector<7x8xf32>
      %cst_32 = arith.constant 0.000000e+00 : f32
      %cst_33 = arith.constant 6.000000e+00 : f32
      %25 = vector.broadcast %cst_32 : f32 to vector<7x8xf32>
      %26 = arith.maximumf %25, %24 : vector<7x8xf32>
      %27 = vector.broadcast %cst_33 : f32 to vector<7x8xf32>
      %28 = arith.minimumf %27, %26 : vector<7x8xf32>
      %c1_34 = arith.constant 1 : index
      %c0_35 = arith.constant 0 : index
      %c0_36 = arith.constant 0 : index
      %29 = vector.load %arg4[%c1_34, %c0_35, %c0_36] : memref<9x8x8xf32, #tpu.memory_space<vmem>>, vector<1x8x8xf32>
      %30 = vector.shape_cast %29 : vector<1x8x8xf32> to vector<8x8xf32>
      %cst_37 = arith.constant dense<0.000000e+00> : vector<7x8xf32>
      %31 = tpu.matmul %28, %30, %cst_37 {dimension_numbers = #tpu.dot_dimension_numbers<[1], [0], [0], [1], [0, 0, 1, 1], [], []>} : vector<7x8xf32>, vector<8x8xf32>, vector<7x8xf32> -> vector<7x8xf32>
      %32 = arith.addf %20, %31 : vector<7x8xf32>
      %c0_i32_38 = arith.constant 0 : i32
      %33 = arith.addi %arg11, %c0_i32_38 : i32
      %34 = arith.index_cast %33 : i32 to index
      %c2 = arith.constant 2 : index
      %c0_39 = arith.constant 0 : index
      %35 = vector.load %arg9[%34, %c2, %c0_39] : memref<9x9x8xf32, #tpu.memory_space<vmem>>, vector<1x7x8xf32>
      %36 = vector.shape_cast %35 : vector<1x7x8xf32> to vector<7x8xf32>
      %cst_40 = arith.constant 0.000000e+00 : f32
      %cst_41 = arith.constant 6.000000e+00 : f32
      %37 = vector.broadcast %cst_40 : f32 to vector<7x8xf32>
      %38 = arith.maximumf %37, %36 : vector<7x8xf32>
      %39 = vector.broadcast %cst_41 : f32 to vector<7x8xf32>
      %40 = arith.minimumf %39, %38 : vector<7x8xf32>
      %c2_42 = arith.constant 2 : index
      %c0_43 = arith.constant 0 : index
      %c0_44 = arith.constant 0 : index
      %41 = vector.load %arg4[%c2_42, %c0_43, %c0_44] : memref<9x8x8xf32, #tpu.memory_space<vmem>>, vector<1x8x8xf32>
      %42 = vector.shape_cast %41 : vector<1x8x8xf32> to vector<8x8xf32>
      %cst_45 = arith.constant dense<0.000000e+00> : vector<7x8xf32>
      %43 = tpu.matmul %40, %42, %cst_45 {dimension_numbers = #tpu.dot_dimension_numbers<[1], [0], [0], [1], [0, 0, 1, 1], [], []>} : vector<7x8xf32>, vector<8x8xf32>, vector<7x8xf32> -> vector<7x8xf32>
      %44 = arith.addf %32, %43 : vector<7x8xf32>
      %c1_i32_46 = arith.constant 1 : i32
      %45 = arith.addi %arg11, %c1_i32_46 : i32
      %46 = arith.index_cast %45 : i32 to index
      %c0_47 = arith.constant 0 : index
      %c0_48 = arith.constant 0 : index
      %47 = vector.load %arg9[%46, %c0_47, %c0_48] : memref<9x9x8xf32, #tpu.memory_space<vmem>>, vector<1x7x8xf32>
      %48 = vector.shape_cast %47 : vector<1x7x8xf32> to vector<7x8xf32>
      %cst_49 = arith.constant 0.000000e+00 : f32
      %cst_50 = arith.constant 6.000000e+00 : f32
      %49 = vector.broadcast %cst_49 : f32 to vector<7x8xf32>
      %50 = arith.maximumf %49, %48 : vector<7x8xf32>
      %51 = vector.broadcast %cst_50 : f32 to vector<7x8xf32>
      %52 = arith.minimumf %51, %50 : vector<7x8xf32>
      %c3 = arith.constant 3 : index
      %c0_51 = arith.constant 0 : index
      %c0_52 = arith.constant 0 : index
      %53 = vector.load %arg4[%c3, %c0_51, %c0_52] : memref<9x8x8xf32, #tpu.memory_space<vmem>>, vector<1x8x8xf32>
      %54 = vector.shape_cast %53 : vector<1x8x8xf32> to vector<8x8xf32>
      %cst_53 = arith.constant dense<0.000000e+00> : vector<7x8xf32>
      %55 = tpu.matmul %52, %54, %cst_53 {dimension_numbers = #tpu.dot_dimension_numbers<[1], [0], [0], [1], [0, 0, 1, 1], [], []>} : vector<7x8xf32>, vector<8x8xf32>, vector<7x8xf32> -> vector<7x8xf32>
      %56 = arith.addf %44, %55 : vector<7x8xf32>
      %c1_i32_54 = arith.constant 1 : i32
      %57 = arith.addi %arg11, %c1_i32_54 : i32
      %58 = arith.index_cast %57 : i32 to index
      %c1_55 = arith.constant 1 : index
      %c0_56 = arith.constant 0 : index
      %59 = vector.load %arg9[%58, %c1_55, %c0_56] : memref<9x9x8xf32, #tpu.memory_space<vmem>>, vector<1x7x8xf32>
      %60 = vector.shape_cast %59 : vector<1x7x8xf32> to vector<7x8xf32>
      %cst_57 = arith.constant 0.000000e+00 : f32
      %cst_58 = arith.constant 6.000000e+00 : f32
      %61 = vector.broadcast %cst_57 : f32 to vector<7x8xf32>
      %62 = arith.maximumf %61, %60 : vector<7x8xf32>
      %63 = vector.broadcast %cst_58 : f32 to vector<7x8xf32>
      %64 = arith.minimumf %63, %62 : vector<7x8xf32>
      %c4 = arith.constant 4 : index
      %c0_59 = arith.constant 0 : index
      %c0_60 = arith.constant 0 : index
      %65 = vector.load %arg4[%c4, %c0_59, %c0_60] : memref<9x8x8xf32, #tpu.memory_space<vmem>>, vector<1x8x8xf32>
      %66 = vector.shape_cast %65 : vector<1x8x8xf32> to vector<8x8xf32>
      %cst_61 = arith.constant dense<0.000000e+00> : vector<7x8xf32>
      %67 = tpu.matmul %64, %66, %cst_61 {dimension_numbers = #tpu.dot_dimension_numbers<[1], [0], [0], [1], [0, 0, 1, 1], [], []>} : vector<7x8xf32>, vector<8x8xf32>, vector<7x8xf32> -> vector<7x8xf32>
      %68 = arith.addf %56, %67 : vector<7x8xf32>
      %c1_i32_62 = arith.constant 1 : i32
      %69 = arith.addi %arg11, %c1_i32_62 : i32
      %70 = arith.index_cast %69 : i32 to index
      %c2_63 = arith.constant 2 : index
      %c0_64 = arith.constant 0 : index
      %71 = vector.load %arg9[%70, %c2_63, %c0_64] : memref<9x9x8xf32, #tpu.memory_space<vmem>>, vector<1x7x8xf32>
      %72 = vector.shape_cast %71 : vector<1x7x8xf32> to vector<7x8xf32>
      %cst_65 = arith.constant 0.000000e+00 : f32
      %cst_66 = arith.constant 6.000000e+00 : f32
      %73 = vector.broadcast %cst_65 : f32 to vector<7x8xf32>
      %74 = arith.maximumf %73, %72 : vector<7x8xf32>
      %75 = vector.broadcast %cst_66 : f32 to vector<7x8xf32>
      %76 = arith.minimumf %75, %74 : vector<7x8xf32>
      %c5 = arith.constant 5 : index
      %c0_67 = arith.constant 0 : index
      %c0_68 = arith.constant 0 : index
      %77 = vector.load %arg4[%c5, %c0_67, %c0_68] : memref<9x8x8xf32, #tpu.memory_space<vmem>>, vector<1x8x8xf32>
      %78 = vector.shape_cast %77 : vector<1x8x8xf32> to vector<8x8xf32>
      %cst_69 = arith.constant dense<0.000000e+00> : vector<7x8xf32>
      %79 = tpu.matmul %76, %78, %cst_69 {dimension_numbers = #tpu.dot_dimension_numbers<[1], [0], [0], [1], [0, 0, 1, 1], [], []>} : vector<7x8xf32>, vector<8x8xf32>, vector<7x8xf32> -> vector<7x8xf32>
      %80 = arith.addf %68, %79 : vector<7x8xf32>
      %c2_i32 = arith.constant 2 : i32
      %81 = arith.addi %arg11, %c2_i32 : i32
      %82 = arith.index_cast %81 : i32 to index
      %c0_70 = arith.constant 0 : index
      %c0_71 = arith.constant 0 : index
      %83 = vector.load %arg9[%82, %c0_70, %c0_71] : memref<9x9x8xf32, #tpu.memory_space<vmem>>, vector<1x7x8xf32>
      %84 = vector.shape_cast %83 : vector<1x7x8xf32> to vector<7x8xf32>
      %cst_72 = arith.constant 0.000000e+00 : f32
      %cst_73 = arith.constant 6.000000e+00 : f32
      %85 = vector.broadcast %cst_72 : f32 to vector<7x8xf32>
      %86 = arith.maximumf %85, %84 : vector<7x8xf32>
      %87 = vector.broadcast %cst_73 : f32 to vector<7x8xf32>
      %88 = arith.minimumf %87, %86 : vector<7x8xf32>
      %c6 = arith.constant 6 : index
      %c0_74 = arith.constant 0 : index
      %c0_75 = arith.constant 0 : index
      %89 = vector.load %arg4[%c6, %c0_74, %c0_75] : memref<9x8x8xf32, #tpu.memory_space<vmem>>, vector<1x8x8xf32>
      %90 = vector.shape_cast %89 : vector<1x8x8xf32> to vector<8x8xf32>
      %cst_76 = arith.constant dense<0.000000e+00> : vector<7x8xf32>
      %91 = tpu.matmul %88, %90, %cst_76 {dimension_numbers = #tpu.dot_dimension_numbers<[1], [0], [0], [1], [0, 0, 1, 1], [], []>} : vector<7x8xf32>, vector<8x8xf32>, vector<7x8xf32> -> vector<7x8xf32>
      %92 = arith.addf %80, %91 : vector<7x8xf32>
      %c2_i32_77 = arith.constant 2 : i32
      %93 = arith.addi %arg11, %c2_i32_77 : i32
      %94 = arith.index_cast %93 : i32 to index
      %c1_78 = arith.constant 1 : index
      %c0_79 = arith.constant 0 : index
      %95 = vector.load %arg9[%94, %c1_78, %c0_79] : memref<9x9x8xf32, #tpu.memory_space<vmem>>, vector<1x7x8xf32>
      %96 = vector.shape_cast %95 : vector<1x7x8xf32> to vector<7x8xf32>
      %cst_80 = arith.constant 0.000000e+00 : f32
      %cst_81 = arith.constant 6.000000e+00 : f32
      %97 = vector.broadcast %cst_80 : f32 to vector<7x8xf32>
      %98 = arith.maximumf %97, %96 : vector<7x8xf32>
      %99 = vector.broadcast %cst_81 : f32 to vector<7x8xf32>
      %100 = arith.minimumf %99, %98 : vector<7x8xf32>
      %c7 = arith.constant 7 : index
      %c0_82 = arith.constant 0 : index
      %c0_83 = arith.constant 0 : index
      %101 = vector.load %arg4[%c7, %c0_82, %c0_83] : memref<9x8x8xf32, #tpu.memory_space<vmem>>, vector<1x8x8xf32>
      %102 = vector.shape_cast %101 : vector<1x8x8xf32> to vector<8x8xf32>
      %cst_84 = arith.constant dense<0.000000e+00> : vector<7x8xf32>
      %103 = tpu.matmul %100, %102, %cst_84 {dimension_numbers = #tpu.dot_dimension_numbers<[1], [0], [0], [1], [0, 0, 1, 1], [], []>} : vector<7x8xf32>, vector<8x8xf32>, vector<7x8xf32> -> vector<7x8xf32>
      %104 = arith.addf %92, %103 : vector<7x8xf32>
      %c2_i32_85 = arith.constant 2 : i32
      %105 = arith.addi %arg11, %c2_i32_85 : i32
      %106 = arith.index_cast %105 : i32 to index
      %c2_86 = arith.constant 2 : index
      %c0_87 = arith.constant 0 : index
      %107 = vector.load %arg9[%106, %c2_86, %c0_87] : memref<9x9x8xf32, #tpu.memory_space<vmem>>, vector<1x7x8xf32>
      %108 = vector.shape_cast %107 : vector<1x7x8xf32> to vector<7x8xf32>
      %cst_88 = arith.constant 0.000000e+00 : f32
      %cst_89 = arith.constant 6.000000e+00 : f32
      %109 = vector.broadcast %cst_88 : f32 to vector<7x8xf32>
      %110 = arith.maximumf %109, %108 : vector<7x8xf32>
      %111 = vector.broadcast %cst_89 : f32 to vector<7x8xf32>
      %112 = arith.minimumf %111, %110 : vector<7x8xf32>
      %c8 = arith.constant 8 : index
      %c0_90 = arith.constant 0 : index
      %c0_91 = arith.constant 0 : index
      %113 = vector.load %arg4[%c8, %c0_90, %c0_91] : memref<9x8x8xf32, #tpu.memory_space<vmem>>, vector<1x8x8xf32>
      %114 = vector.shape_cast %113 : vector<1x8x8xf32> to vector<8x8xf32>
      %cst_92 = arith.constant dense<0.000000e+00> : vector<7x8xf32>
      %115 = tpu.matmul %112, %114, %cst_92 {dimension_numbers = #tpu.dot_dimension_numbers<[1], [0], [0], [1], [0, 0, 1, 1], [], []>} : vector<7x8xf32>, vector<8x8xf32>, vector<7x8xf32> -> vector<7x8xf32>
      %116 = arith.addf %104, %115 : vector<7x8xf32>
      %117 = vector.broadcast %6 : vector<1x8xf32> to vector<7x8xf32>
      %118 = arith.addf %116, %117 : vector<7x8xf32>
      %cst_93 = arith.constant 0.000000e+00 : f32
      %cst_94 = arith.constant 6.000000e+00 : f32
      %119 = vector.broadcast %cst_93 : f32 to vector<7x8xf32>
      %120 = arith.maximumf %119, %118 : vector<7x8xf32>
      %121 = vector.broadcast %cst_94 : f32 to vector<7x8xf32>
      %122 = arith.minimumf %121, %120 : vector<7x8xf32>
      %c1_i32_95 = arith.constant 1 : i32
      %123 = arith.addi %arg11, %c1_i32_95 : i32
      %124 = arith.index_cast %123 : i32 to index
      %c1_96 = arith.constant 1 : index
      %c0_97 = arith.constant 0 : index
      %125 = vector.load %arg10[%124, %c1_96, %c0_97] : memref<9x9x8xf32, #tpu.memory_space<vmem>>, vector<1x7x8xf32>
      %126 = vector.shape_cast %125 : vector<1x7x8xf32> to vector<7x8xf32>
      %127 = vector.shape_cast %122 : vector<7x8xf32> to vector<1x7x8xf32>
      tpu.vector_store %arg10[%124, %c1_96, %c0_97], %127 {strides = array<i32>} : memref<9x9x8xf32, #tpu.memory_space<vmem>>, vector<1x7x8xf32>,
    }
    %c7_i32_14 = arith.constant 7 : i32
    %c0_15 = arith.constant 0 : index
    %c0_16 = arith.constant 0 : index
    %8 = vector.load %arg7[%c0_15, %c0_16] : memref<1x8xf32, #tpu.memory_space<vmem>>, vector<1x8xf32>
    %c0_i32_17 = arith.constant 0 : i32
    %c7_i32_18 = arith.constant 7 : i32
    %9 = arith.addi %c0_i32_17, %c7_i32_18 : i32
    %c1_i32_19 = arith.constant 1 : i32
    scf.for %arg11 = %c0_i32_17 to %9 step %c1_i32_19  : i32 {
      %c0_i32_21 = arith.constant 0 : i32
      %10 = arith.addi %arg11, %c0_i32_21 : i32
      %11 = arith.index_cast %10 : i32 to index
      %c0_22 = arith.constant 0 : index
      %c0_23 = arith.constant 0 : index
      %12 = vector.load %arg10[%11, %c0_22, %c0_23] : memref<9x9x8xf32, #tpu.memory_space<vmem>>, vector<1x7x8xf32>
      %13 = vector.shape_cast %12 : vector<1x7x8xf32> to vector<7x8xf32>
      %c0_24 = arith.constant 0 : index
      %c0_25 = arith.constant 0 : index
      %c0_26 = arith.constant 0 : index
      %14 = vector.load %arg6[%c0_24, %c0_25, %c0_26] : memref<9x8x8xf32, #tpu.memory_space<vmem>>, vector<1x8x8xf32>
      %15 = vector.shape_cast %14 : vector<1x8x8xf32> to vector<8x8xf32>
      %cst_27 = arith.constant dense<0.000000e+00> : vector<7x8xf32>
      %16 = tpu.matmul %13, %15, %cst_27 {dimension_numbers = #tpu.dot_dimension_numbers<[1], [0], [0], [1], [0, 0, 1, 1], [], []>} : vector<7x8xf32>, vector<8x8xf32>, vector<7x8xf32> -> vector<7x8xf32>
      %c0_i32_28 = arith.constant 0 : i32
      %17 = arith.addi %arg11, %c0_i32_28 : i32
      %18 = arith.index_cast %17 : i32 to index
      %c1 = arith.constant 1 : index
      %c0_29 = arith.constant 0 : index
      %19 = vector.load %arg10[%18, %c1, %c0_29] : memref<9x9x8xf32, #tpu.memory_space<vmem>>, vector<1x7x8xf32>
      %20 = vector.shape_cast %19 : vector<1x7x8xf32> to vector<7x8xf32>
      %c1_30 = arith.constant 1 : index
      %c0_31 = arith.constant 0 : index
      %c0_32 = arith.constant 0 : index
      %21 = vector.load %arg6[%c1_30, %c0_31, %c0_32] : memref<9x8x8xf32, #tpu.memory_space<vmem>>, vector<1x8x8xf32>
      %22 = vector.shape_cast %21 : vector<1x8x8xf32> to vector<8x8xf32>
      %cst_33 = arith.constant dense<0.000000e+00> : vector<7x8xf32>
      %23 = tpu.matmul %20, %22, %cst_33 {dimension_numbers = #tpu.dot_dimension_numbers<[1], [0], [0], [1], [0, 0, 1, 1], [], []>} : vector<7x8xf32>, vector<8x8xf32>, vector<7x8xf32> -> vector<7x8xf32>
      %24 = arith.addf %16, %23 : vector<7x8xf32>
      %c0_i32_34 = arith.constant 0 : i32
      %25 = arith.addi %arg11, %c0_i32_34 : i32
      %26 = arith.index_cast %25 : i32 to index
      %c2 = arith.constant 2 : index
      %c0_35 = arith.constant 0 : index
      %27 = vector.load %arg10[%26, %c2, %c0_35] : memref<9x9x8xf32, #tpu.memory_space<vmem>>, vector<1x7x8xf32>
      %28 = vector.shape_cast %27 : vector<1x7x8xf32> to vector<7x8xf32>
      %c2_36 = arith.constant 2 : index
      %c0_37 = arith.constant 0 : index
      %c0_38 = arith.constant 0 : index
      %29 = vector.load %arg6[%c2_36, %c0_37, %c0_38] : memref<9x8x8xf32, #tpu.memory_space<vmem>>, vector<1x8x8xf32>
      %30 = vector.shape_cast %29 : vector<1x8x8xf32> to vector<8x8xf32>
      %cst_39 = arith.constant dense<0.000000e+00> : vector<7x8xf32>
      %31 = tpu.matmul %28, %30, %cst_39 {dimension_numbers = #tpu.dot_dimension_numbers<[1], [0], [0], [1], [0, 0, 1, 1], [], []>} : vector<7x8xf32>, vector<8x8xf32>, vector<7x8xf32> -> vector<7x8xf32>
      %32 = arith.addf %24, %31 : vector<7x8xf32>
      %c1_i32_40 = arith.constant 1 : i32
      %33 = arith.addi %arg11, %c1_i32_40 : i32
      %34 = arith.index_cast %33 : i32 to index
      %c0_41 = arith.constant 0 : index
      %c0_42 = arith.constant 0 : index
      %35 = vector.load %arg10[%34, %c0_41, %c0_42] : memref<9x9x8xf32, #tpu.memory_space<vmem>>, vector<1x7x8xf32>
      %36 = vector.shape_cast %35 : vector<1x7x8xf32> to vector<7x8xf32>
      %c3 = arith.constant 3 : index
      %c0_43 = arith.constant 0 : index
      %c0_44 = arith.constant 0 : index
      %37 = vector.load %arg6[%c3, %c0_43, %c0_44] : memref<9x8x8xf32, #tpu.memory_space<vmem>>, vector<1x8x8xf32>
      %38 = vector.shape_cast %37 : vector<1x8x8xf32> to vector<8x8xf32>
      %cst_45 = arith.constant dense<0.000000e+00> : vector<7x8xf32>
      %39 = tpu.matmul %36, %38, %cst_45 {dimension_numbers = #tpu.dot_dimension_numbers<[1], [0], [0], [1], [0, 0, 1, 1], [], []>} : vector<7x8xf32>, vector<8x8xf32>, vector<7x8xf32> -> vector<7x8xf32>
      %40 = arith.addf %32, %39 : vector<7x8xf32>
      %c1_i32_46 = arith.constant 1 : i32
      %41 = arith.addi %arg11, %c1_i32_46 : i32
      %42 = arith.index_cast %41 : i32 to index
      %c1_47 = arith.constant 1 : index
      %c0_48 = arith.constant 0 : index
      %43 = vector.load %arg10[%42, %c1_47, %c0_48] : memref<9x9x8xf32, #tpu.memory_space<vmem>>, vector<1x7x8xf32>
      %44 = vector.shape_cast %43 : vector<1x7x8xf32> to vector<7x8xf32>
      %c4 = arith.constant 4 : index
      %c0_49 = arith.constant 0 : index
      %c0_50 = arith.constant 0 : index
      %45 = vector.load %arg6[%c4, %c0_49, %c0_50] : memref<9x8x8xf32, #tpu.memory_space<vmem>>, vector<1x8x8xf32>
      %46 = vector.shape_cast %45 : vector<1x8x8xf32> to vector<8x8xf32>
      %cst_51 = arith.constant dense<0.000000e+00> : vector<7x8xf32>
      %47 = tpu.matmul %44, %46, %cst_51 {dimension_numbers = #tpu.dot_dimension_numbers<[1], [0], [0], [1], [0, 0, 1, 1], [], []>} : vector<7x8xf32>, vector<8x8xf32>, vector<7x8xf32> -> vector<7x8xf32>
      %48 = arith.addf %40, %47 : vector<7x8xf32>
      %c1_i32_52 = arith.constant 1 : i32
      %49 = arith.addi %arg11, %c1_i32_52 : i32
      %50 = arith.index_cast %49 : i32 to index
      %c2_53 = arith.constant 2 : index
      %c0_54 = arith.constant 0 : index
      %51 = vector.load %arg10[%50, %c2_53, %c0_54] : memref<9x9x8xf32, #tpu.memory_space<vmem>>, vector<1x7x8xf32>
      %52 = vector.shape_cast %51 : vector<1x7x8xf32> to vector<7x8xf32>
      %c5 = arith.constant 5 : index
      %c0_55 = arith.constant 0 : index
      %c0_56 = arith.constant 0 : index
      %53 = vector.load %arg6[%c5, %c0_55, %c0_56] : memref<9x8x8xf32, #tpu.memory_space<vmem>>, vector<1x8x8xf32>
      %54 = vector.shape_cast %53 : vector<1x8x8xf32> to vector<8x8xf32>
      %cst_57 = arith.constant dense<0.000000e+00> : vector<7x8xf32>
      %55 = tpu.matmul %52, %54, %cst_57 {dimension_numbers = #tpu.dot_dimension_numbers<[1], [0], [0], [1], [0, 0, 1, 1], [], []>} : vector<7x8xf32>, vector<8x8xf32>, vector<7x8xf32> -> vector<7x8xf32>
      %56 = arith.addf %48, %55 : vector<7x8xf32>
      %c2_i32 = arith.constant 2 : i32
      %57 = arith.addi %arg11, %c2_i32 : i32
      %58 = arith.index_cast %57 : i32 to index
      %c0_58 = arith.constant 0 : index
      %c0_59 = arith.constant 0 : index
      %59 = vector.load %arg10[%58, %c0_58, %c0_59] : memref<9x9x8xf32, #tpu.memory_space<vmem>>, vector<1x7x8xf32>
      %60 = vector.shape_cast %59 : vector<1x7x8xf32> to vector<7x8xf32>
      %c6 = arith.constant 6 : index
      %c0_60 = arith.constant 0 : index
      %c0_61 = arith.constant 0 : index
      %61 = vector.load %arg6[%c6, %c0_60, %c0_61] : memref<9x8x8xf32, #tpu.memory_space<vmem>>, vector<1x8x8xf32>
      %62 = vector.shape_cast %61 : vector<1x8x8xf32> to vector<8x8xf32>
      %cst_62 = arith.constant dense<0.000000e+00> : vector<7x8xf32>
      %63 = tpu.matmul %60, %62, %cst_62 {dimension_numbers = #tpu.dot_dimension_numbers<[1], [0], [0], [1], [0, 0, 1, 1], [], []>} : vector<7x8xf32>, vector<8x8xf32>, vector<7x8xf32> -> vector<7x8xf32>
      %64 = arith.addf %56, %63 : vector<7x8xf32>
      %c2_i32_63 = arith.constant 2 : i32
      %65 = arith.addi %arg11, %c2_i32_63 : i32
      %66 = arith.index_cast %65 : i32 to index
      %c1_64 = arith.constant 1 : index
      %c0_65 = arith.constant 0 : index
      %67 = vector.load %arg10[%66, %c1_64, %c0_65] : memref<9x9x8xf32, #tpu.memory_space<vmem>>, vector<1x7x8xf32>
      %68 = vector.shape_cast %67 : vector<1x7x8xf32> to vector<7x8xf32>
      %c7 = arith.constant 7 : index
      %c0_66 = arith.constant 0 : index
      %c0_67 = arith.constant 0 : index
      %69 = vector.load %arg6[%c7, %c0_66, %c0_67] : memref<9x8x8xf32, #tpu.memory_space<vmem>>, vector<1x8x8xf32>
      %70 = vector.shape_cast %69 : vector<1x8x8xf32> to vector<8x8xf32>
      %cst_68 = arith.constant dense<0.000000e+00> : vector<7x8xf32>
      %71 = tpu.matmul %68, %70, %cst_68 {dimension_numbers = #tpu.dot_dimension_numbers<[1], [0], [0], [1], [0, 0, 1, 1], [], []>} : vector<7x8xf32>, vector<8x8xf32>, vector<7x8xf32> -> vector<7x8xf32>
      %72 = arith.addf %64, %71 : vector<7x8xf32>
      %c2_i32_69 = arith.constant 2 : i32
      %73 = arith.addi %arg11, %c2_i32_69 : i32
      %74 = arith.index_cast %73 : i32 to index
      %c2_70 = arith.constant 2 : index
      %c0_71 = arith.constant 0 : index
      %75 = vector.load %arg10[%74, %c2_70, %c0_71] : memref<9x9x8xf32, #tpu.memory_space<vmem>>, vector<1x7x8xf32>
      %76 = vector.shape_cast %75 : vector<1x7x8xf32> to vector<7x8xf32>
      %c8 = arith.constant 8 : index
      %c0_72 = arith.constant 0 : index
      %c0_73 = arith.constant 0 : index
      %77 = vector.load %arg6[%c8, %c0_72, %c0_73] : memref<9x8x8xf32, #tpu.memory_space<vmem>>, vector<1x8x8xf32>
      %78 = vector.shape_cast %77 : vector<1x8x8xf32> to vector<8x8xf32>
      %cst_74 = arith.constant dense<0.000000e+00> : vector<7x8xf32>
      %79 = tpu.matmul %76, %78, %cst_74 {dimension_numbers = #tpu.dot_dimension_numbers<[1], [0], [0], [1], [0, 0, 1, 1], [], []>} : vector<7x8xf32>, vector<8x8xf32>, vector<7x8xf32> -> vector<7x8xf32>
      %80 = arith.addf %72, %79 : vector<7x8xf32>
      %81 = vector.broadcast %8 : vector<1x8xf32> to vector<7x8xf32>
      %82 = arith.addf %80, %81 : vector<7x8xf32>
      %c1_i32_75 = arith.constant 1 : i32
      %83 = arith.addi %arg11, %c1_i32_75 : i32
      %84 = arith.index_cast %83 : i32 to index
      %c1_76 = arith.constant 1 : index
      %c0_77 = arith.constant 0 : index
      %85 = vector.load %arg9[%84, %c1_76, %c0_77] : memref<9x9x8xf32, #tpu.memory_space<vmem>>, vector<1x7x8xf32>
      %86 = vector.shape_cast %85 : vector<1x7x8xf32> to vector<7x8xf32>
      %87 = arith.addf %82, %86 : vector<7x8xf32>
      %cst_78 = arith.constant 0.000000e+00 : f32
      %cst_79 = arith.constant 6.000000e+00 : f32
      %88 = vector.broadcast %cst_78 : f32 to vector<7x8xf32>
      %89 = arith.maximumf %88, %87 : vector<7x8xf32>
      %90 = vector.broadcast %cst_79 : f32 to vector<7x8xf32>
      %91 = arith.minimumf %90, %89 : vector<7x8xf32>
      %c0_80 = arith.constant 0 : index
      %92 = arith.index_cast %arg11 : i32 to index
      %c0_81 = arith.constant 0 : index
      %c0_82 = arith.constant 0 : index
      %93 = vector.load %arg8[%c0_80, %92, %c0_81, %c0_82] : memref<1x7x7x8xf32, #tpu.memory_space<vmem>>, vector<1x1x7x8xf32>
      %94 = vector.shape_cast %93 : vector<1x1x7x8xf32> to vector<7x8xf32>
      %95 = vector.shape_cast %91 : vector<7x8xf32> to vector<1x1x7x8xf32>
      tpu.vector_store %arg8[%c0_80, %92, %c0_81, %c0_82], %95 {strides = array<i32>} : memref<1x7x7x8xf32, #tpu.memory_space<vmem>>, vector<1x1x7x8xf32>,
    }
    %c7_i32_20 = arith.constant 7 : i32
    return
  }
  func.func @transform_0(%arg0: i32) -> (i32, i32, i32, i32) {
    %c0_i32 = arith.constant 0 : i32
    %c0_i32_0 = arith.constant 0 : i32
    %c0_i32_1 = arith.constant 0 : i32
    %c0_i32_2 = arith.constant 0 : i32
    return %arg0, %c0_i32, %c0_i32_0, %c0_i32_1 : i32, i32, i32, i32
  }
  func.func @transform_1(%arg0: i32) -> (i32, i32, i32) {
    %c0_i32 = arith.constant 0 : i32
    %c0_i32_0 = arith.constant 0 : i32
    %c0_i32_1 = arith.constant 0 : i32
    %c0_i32_2 = arith.constant 0 : i32
    return %c0_i32, %c0_i32_0, %c0_i32_1 : i32, i32, i32
  }
  func.func @transform_2(%arg0: i32) -> (i32, i32) {
    %c0_i32 = arith.constant 0 : i32
    %c0_i32_0 = arith.constant 0 : i32
    %c0_i32_1 = arith.constant 0 : i32
    return %c0_i32, %c0_i32_0 : i32, i32
  }
  func.func @transform_3(%arg0: i32) -> (i32, i32, i32) {
    %c0_i32 = arith.constant 0 : i32
    %c0_i32_0 = arith.constant 0 : i32
    %c0_i32_1 = arith.constant 0 : i32
    %c0_i32_2 = arith.constant 0 : i32
    return %c0_i32, %c0_i32_0, %c0_i32_1 : i32, i32, i32
  }
  func.func @transform_4(%arg0: i32) -> (i32, i32) {
    %c0_i32 = arith.constant 0 : i32
    %c0_i32_0 = arith.constant 0 : i32
    %c0_i32_1 = arith.constant 0 : i32
    return %c0_i32, %c0_i32_0 : i32, i32
  }
  func.func @transform_5(%arg0: i32) -> (i32, i32, i32) {
    %c0_i32 = arith.constant 0 : i32
    %c0_i32_0 = arith.constant 0 : i32
    %c0_i32_1 = arith.constant 0 : i32
    %c0_i32_2 = arith.constant 0 : i32
    return %c0_i32, %c0_i32_0, %c0_i32_1 : i32, i32, i32
  }
  func.func @transform_6(%arg0: i32) -> (i32, i32) {
    %c0_i32 = arith.constant 0 : i32
    %c0_i32_0 = arith.constant 0 : i32
    %c0_i32_1 = arith.constant 0 : i32
    return %c0_i32, %c0_i32_0 : i32, i32
  }
  func.func @transform_7(%arg0: i32) -> (i32, i32, i32, i32) {
    %c0_i32 = arith.constant 0 : i32
    %c0_i32_0 = arith.constant 0 : i32
    %c0_i32_1 = arith.constant 0 : i32
    %c0_i32_2 = arith.constant 0 : i32
    return %arg0, %c0_i32, %c0_i32_0, %c0_i32_1 : i32, i32, i32, i32
  }
}

</mosaic_0001>

<bundles_post_ra>
// kernel: tpu_custom_call.1
= control target key start
LH: loop header
LB: loop body
LE: loop exit
PB: predicated region body
PF: predicated region fallthrough
CT: control target
= control target key end

     0   :  { %12 = vsyncpa [#allocation5], 0  ;;  %s4201_s0 = inlined_call_operand.hbm [shape: f32[2,32,8,4], index: 0, kind: input, shape index: {}]   ;;  %s4202_s1 = inlined_call_operand.hbm [shape: f32[9,4,8], index: 1, kind: input, shape index: {}]   ;;  %s4203_s2 = inlined_call_operand.hbm [shape: f32[1,8], index: 2, kind: input, shape index: {}]   ;;  %s4204_s3 = inlined_call_operand.hbm [shape: f32[9,8,8], index: 3, kind: input, shape index: {}]   ;;  %s4205_s4 = inlined_call_operand.hbm [shape: f32[1,8], index: 4, kind: input, shape index: {}]   ;;  %s4206_s5 = inlined_call_operand.hbm [shape: f32[9,8,8], index: 5, kind: input, shape index: {}]   ;;  %s4207_s6 = inlined_call_operand.hbm [shape: f32[1,8], index: 6, kind: input, shape index: {}]   ;;  %s4208_s7 = inlined_call_operand.hbm [shape: f32[2,7,7,8], index: 7, kind: output, shape index: {}]  }
   0x1   :  { %14 = vsyncpa [#allocation5 + $0x1], 0 }
   0x2   :  { %15 = vsyncpa [#allocation8], 0 }
   0x3   :  { %16 = vsyncpa [#allocation11], 0 }
   0x4   :  { %17 = vsyncpa [#allocation14], 0 }
   0x5   :  { %18 = vsyncpa [#allocation6], 0 }
   0x6   :  { %20 = vsyncpa [#allocation6 + $0x1], 0  ;;  %s3628_s24 = smov 0   ;;  %s3630_s25 = smov 0  }
   0x7   :  { %s3632_s26 = smov 0   ;;  %s3634_s27 = smov 0  }
   0x8 LB: > { %s3567_s28 = smov [#allocation7]   ;;  %s3649_s30 = sadd.s32 4294967295, %s3553_s27   ;;  %s3553_s27 = sphi %s3634_s27, %s4236_s27   ;;  %s3549_s26 = sphi %s3632_s26, %s4235_s26   ;;  %s3545_s25 = sphi %s3630_s25, %s4234_s25   ;;  %s3541_s24 = sphi %s3628_s24, %s4233_s24  }
   0x9   : > { %s221_s29 = sshll.u32 %s3567_s28, 4  ;;  %p2830_p0 = scmp.ge.s32.totalorder %s3553_s27, 1  ;;  %s3654_s29 = int_to_ptr.vmem [resolvable:$true] %s221_s29 }
   0xa   : > { %p4209_p1 = scmp.eq.s32.totalorder %s3649_s30, 0  ;;  %p209_p2 = scmp.lt.s32.totalorder %s3553_s27, 3 }
   0xb   : > { %s3568_s9 = smov [#allocation10]   ;;  %s3569_s12 = smov [#allocation13]  }
   0xc   : > { %p3656_p3 = pnand %p2830_p0, %p209_p2  ;;  %s245_s10 = sshll.u32 %s3568_s9, 4  ;;  %s3669_s10 = int_to_ptr.vmem [resolvable:$true] %s245_s10 }
   0xd   : > { %s3671_s13 = sshll.u32 %s3569_s12, 4  ;;  %s3265_s16 = scalar_lea.hbm %s4202_s1, 576  ;;  %s270_s13 = int_to_ptr.vmem [resolvable:$true] %s3671_s13 }
   0xe   : > { %s4213_s8 = scalar_select %p3656_p3, 1, 0 }
   0xf   : > { %p3149_p5 = pneg %p3656_p3  ;;  %p3266_p7 = scmp.ne.s32.totalorder %s4202_s1, %s3265_s16 }
  0x10   : > { %p3272_p11 = scmp.lt.u32.totalorder %s3265_s16, %s4202_s1 }
  0x11   : > { %p3665_p6 = pnand %p3149_p5, %p4209_p1 }
  0x13   : > { %p3681_p8 = pneg %p3665_p6 }
  0x15   : > { %p3268_p9 = pnand %p3681_p8, %p3266_p7 }
  0x17   : > { %p3269_p10 = pneg %p3268_p9 }
  0x19   : > { %p3274_p12 = pnand %p3272_p11, %p3269_p10 }
  0x1b   : > { %3277 = shalt.err (!%p3274_p12)
}
  0x1c   : > { %s3278_s22 = scalar_lea.vmem %s3654_s29, 576  ;;  %p3286_p5 = scmp.lt.s32.totalorder %s3654_s29, %s3654_s29 }
  0x1d   : > { %p3279_p13 = scmp.ne.s32.totalorder %s3654_s29, %s3278_s22  ;;  %p3287_p4 = scmp.lt.s32.totalorder %s3278_s22, %s3278_s22 }
  0x1f   : > { %p3281_p0 = pnand %p3279_p13, %p3681_p8  ;;  %p3288_p7 = por %p3287_p4, %p3286_p5 }
  0x21   : > { %p3282_p2 = pneg %p3281_p0 }
  0x23   : > { %p3289_p9 = pnand %p3288_p7, %p3282_p2 }
  0x25   : > { %3292 = shalt.err (!%p3289_p9)
}
  0x26   : > { %s3570_s23 = smov 64   ;;  %s3571_s28 = smov 4  }
  0x27   : > { %3152 = dma.hbm_to_vmem [thread:$0]  (!%p3665_p6), %s4202_s1, 576, %s3654_s29, [#allocation8], %s3570_s23, %s3570_s23, %s3571_s28  }
  0x28   : > { %s3293_s16 = scalar_lea.hbm %s4204_s3, 1152 }
  0x29   : > { %p3294_p4 = scmp.ne.s32.totalorder %s4204_s3, %s3293_s16  ;;  %p3300_p12 = scmp.lt.u32.totalorder %s3293_s16, %s4204_s3 }
  0x2b   : > { %p3296_p10 = pnand %p3294_p4, %p3681_p8 }
  0x2d   : > { %p3297_p11 = pneg %p3296_p10 }
  0x2f   : > { %p3302_p13 = pnand %p3300_p12, %p3297_p11 }
  0x31   : > { %3305 = shalt.err (!%p3302_p13)
}
  0x32   : > { %s3306_s29 = scalar_lea.vmem %s3669_s10, 1152  ;;  %p3314_p7 = scmp.lt.s32.totalorder %s3669_s10, %s3669_s10 }
  0x33   : > { %p3307_p0 = scmp.ne.s32.totalorder %s3669_s10, %s3306_s29  ;;  %p3315_p9 = scmp.lt.s32.totalorder %s3306_s29, %s3306_s29 }
  0x35   : > { %p3309_p2 = pnand %p3307_p0, %p3681_p8  ;;  %p3316_p4 = por %p3315_p9, %p3314_p7 }
  0x37   : > { %p3310_p5 = pneg %p3309_p2 }
  0x39   : > { %p3317_p10 = pnand %p3316_p4, %p3310_p5 }
  0x3b   : > { %3320 = shalt.err (!%p3317_p10)
}
  0x3c   : > { %s4211_s22 = smov 128   ;;  %s3573_s23 = smov 8  }
  0x3d   : > { %3158 = dma.hbm_to_vmem [thread:$0]  (!%p3665_p6), %s4204_s3, 1152, %s3669_s10, [#allocation11], %s4211_s22, %s4211_s22, %s3573_s23  }
  0x3e   : > { %s3321_s15 = scalar_lea.hbm %s4206_s5, 1152 }
  0x3f   : > { %p3322_p11 = scmp.ne.s32.totalorder %s4206_s5, %s3321_s15  ;;  %p3328_p0 = scmp.lt.u32.totalorder %s3321_s15, %s4206_s5 }
  0x41   : > { %p3324_p12 = pnand %p3322_p11, %p3681_p8 }
  0x43   : > { %p3325_p13 = pneg %p3324_p12 }
  0x45   : > { %p3330_p2 = pnand %p3328_p0, %p3325_p13 }
  0x47   : > { %3333 = shalt.err (!%p3330_p2)
}
  0x48   : > { %s3334_s21 = scalar_lea.vmem %s270_s13, 1152  ;;  %p3342_p4 = scmp.lt.s32.totalorder %s270_s13, %s270_s13 }
  0x49   : > { %p3335_p5 = scmp.ne.s32.totalorder %s270_s13, %s3334_s21  ;;  %p3343_p10 = scmp.lt.s32.totalorder %s3334_s21, %s3334_s21 }
  0x4b   : > { %p3337_p7 = pnand %p3335_p5, %p3681_p8  ;;  %p3344_p1 = por %p3343_p10, %p3342_p4 }
  0x4d   : > { %p3338_p9 = pneg %p3337_p7 }
  0x4f   : > { %p3345_p3 = pnand %p3344_p1, %p3338_p9 }
  0x51   : > { %3348 = shalt.err (!%p3345_p3)
}
  0x52   : > { %3164 = dma.hbm_to_vmem [thread:$0]  (!%p3665_p6), %s4206_s5, 1152, %s270_s13, [#allocation14], %s4211_s22, %s4211_s22, %s3573_s23  }
  0x53   : > { %s3574_s28 = smov [#allocation9]   ;;  %s3575_s12 = smov [#allocation12]  }
  0x54   : > { %s235_s9 = sshll.u32 %s3574_s28, 4  ;;  %s259_s14 = sshll.u32 %s3575_s12, 4  ;;  %s236_s9 = int_to_ptr.vmem [resolvable:$true] %s235_s9  ;;  %s260_s14 = int_to_ptr.vmem [resolvable:$true] %s259_s14 }
  0x55   : > { %s3349_s17 = scalar_lea.hbm %s4203_s2, 16 }
  0x56   : > { %p3350_p1 = scmp.ne.s32.totalorder %s4203_s2, %s3349_s17  ;;  %p3356_p12 = scmp.lt.u32.totalorder %s3349_s17, %s4203_s2 }
  0x58   : > { %p3352_p3 = pnand %p3350_p1, %p3681_p8 }
  0x5a   : > { %p3353_p11 = pneg %p3352_p3 }
  0x5c   : > { %p3358_p13 = pnand %p3356_p12, %p3353_p11 }
  0x5e   : > { %3361 = shalt.err (!%p3358_p13)
}
  0x5f   : > { %s3362_s13 = scalar_lea.vmem %s236_s9, 16  ;;  %s3369_s29 = scalar_lea.vmem %s236_s9, 32 }
  0x60   : > { %p3363_p0 = scmp.ne.s32.totalorder %s236_s9, %s3362_s13  ;;  %p3370_p7 = scmp.lt.s32.totalorder %s236_s9, %s236_s9 }
  0x61   : > { %p3371_p9 = scmp.lt.s32.totalorder %s3369_s29, %s3362_s13 }
  0x62   : > { %p3365_p2 = pnand %p3363_p0, %p3681_p8 }
  0x63   : > { %p3372_p4 = por %p3371_p9, %p3370_p7 }
  0x64   : > { %p3366_p5 = pneg %p3365_p2 }
  0x66   : > { %p3373_p10 = pnand %p3372_p4, %p3366_p5 }
  0x68   : > { %3376 = shalt.err (!%p3373_p10)
}
  0x69   : > { %3155 = dma.hbm_to_vmem [thread:$0]  (!%p3665_p6), %s4203_s2, 16, %s236_s9, [#allocation8]  }
  0x6a   : > { %s3377_s17 = scalar_lea.hbm %s4205_s4, 16 }
  0x6b   : > { %p3378_p1 = scmp.ne.s32.totalorder %s4205_s4, %s3377_s17  ;;  %p3384_p12 = scmp.lt.u32.totalorder %s3377_s17, %s4205_s4 }
  0x6d   : > { %p3380_p3 = pnand %p3378_p1, %p3681_p8 }
  0x6f   : > { %p3381_p11 = pneg %p3380_p3 }
  0x71   : > { %p3386_p13 = pnand %p3384_p12, %p3381_p11 }
  0x73   : > { %3389 = shalt.err (!%p3386_p13)
}
  0x74   : > { %s3390_s13 = scalar_lea.vmem %s260_s14, 16  ;;  %s3397_s9 = scalar_lea.vmem %s260_s14, 32 }
  0x75   : > { %p3391_p0 = scmp.ne.s32.totalorder %s260_s14, %s3390_s13  ;;  %p3398_p7 = scmp.lt.s32.totalorder %s260_s14, %s260_s14 }
  0x76   : > { %p3399_p9 = scmp.lt.s32.totalorder %s3397_s9, %s3390_s13 }
  0x77   : > { %p3393_p2 = pnand %p3391_p0, %p3681_p8 }
  0x78   : > { %p3400_p4 = por %p3399_p9, %p3398_p7 }
  0x79   : > { %p3394_p5 = pneg %p3393_p2 }
  0x7b   : > { %p3401_p10 = pnand %p3400_p4, %p3394_p5 }
  0x7d   : > { %3404 = shalt.err (!%p3401_p10)
}
  0x7e   : > { %3161 = dma.hbm_to_vmem [thread:$0]  (!%p3665_p6), %s4205_s4, 16, %s260_s14, [#allocation11]  }
  0x7f   : > { %s3576_s12 = smov [#allocation15]   ;;  %s3405_s18 = scalar_lea.hbm %s4207_s6, 16 }
  0x80   : > { %s283_s15 = sshll.u32 %s3576_s12, 4  ;;  %p3406_p1 = scmp.ne.s32.totalorder %s4207_s6, %s3405_s18  ;;  %s284_s15 = int_to_ptr.vmem [resolvable:$true] %s283_s15 }
  0x81   : > { %p3412_p12 = scmp.lt.u32.totalorder %s3405_s18, %s4207_s6 }
  0x82   : > { %p3408_p3 = pnand %p3406_p1, %p3681_p8 }
  0x84   : > { %p3409_p11 = pneg %p3408_p3 }
  0x86   : > { %p3414_p13 = pnand %p3412_p12, %p3409_p11 }
  0x88   : > { %3417 = shalt.err (!%p3414_p13)
}
  0x89   : > { %s3418_s14 = scalar_lea.vmem %s284_s15, 16  ;;  %s3425_s9 = scalar_lea.vmem %s284_s15, 32 }
  0x8a   : > { %p3419_p0 = scmp.ne.s32.totalorder %s284_s15, %s3418_s14  ;;  %p3426_p7 = scmp.lt.s32.totalorder %s284_s15, %s284_s15 }
  0x8b   : > { %p3427_p9 = scmp.lt.s32.totalorder %s3425_s9, %s3418_s14 }
  0x8c   : > { %p3421_p2 = pnand %p3419_p0, %p3681_p8 }
  0x8d   : > { %p3428_p4 = por %p3427_p9, %p3426_p7 }
  0x8e   : > { %p3422_p5 = pneg %p3421_p2 }
  0x90   : > { %p3429_p10 = pnand %p3428_p4, %p3422_p5 }
  0x92   : > { %3432 = shalt.err (!%p3429_p10)
}
  0x93   : > { %3167 = dma.hbm_to_vmem [thread:$0]  (!%p3665_p6), %s4207_s6, 16, %s284_s15, [#allocation14]  }
  0x94   : > { %s2829_s19 = sadd.s32 4294967294, %s3553_s27   ;;  %s3806_s11 = sadd.s32 1, %s3553_s27  }
  0x95   : > { %s30_s12 = ssub.s32 %s3553_s27, %s3806_s11  ;;  %s33_s16 = sadd.s32 1, %s3549_s26 }
  0x96   : > { %p31_p8 = scmp.eq.s32.totalorder %s30_s12, 0  ;;  %p40_p1 = scmp.ne.s32.totalorder %s3549_s26, %s3545_s25 }
  0x97   : > { %p41_p3 = scmp.eq.s32.totalorder %s3553_s27, 0  ;;  %p46_p11 = scmp.ne.s32.totalorder %s3545_s25, %s3541_s24 }
  0x98   : > { %s3817_s17 = scalar_select %p31_p8, %s3549_s26, %s33_s16  }
  0x99   : > { %p3819_p12 = por %p41_p3, %p40_p1  ;;  %p4217_p13 = scmp.eq.s32.totalorder %s3649_s30, 0 }
  0x9a   : > { %p196_p0 = scmp.eq.s32.totalorder %s3649_s30, 1  ;;  %p202_p2 = scmp.eq.s32.totalorder %s2829_s19, 1 }
  0x9b   : > { %p3825_p6 = por %p4217_p13, %p46_p11  ;;  %p3182_p5 = scmp.lt.s32.totalorder %s3553_s27, 2 }
  0x9c   : > { %s294_s20 = sand.u32 1, %s3549_s26   ;;  %p3832_p7 = por %p196_p0, %p40_p1 }
  0x9d   : > { %p3836_p9 = por %p202_p2, %p46_p11  ;;  %s2838_s13 = sshll.u32 %s294_s20, 8 }
  0x9e   : > { %s4219_s21 = scalar_select %p3832_p7, 1, 0 }
  0x9f   : > { %s4220_s10 = scalar_select %p3836_p9, 1, 0 }
  0xa0   : > { %s2929_s14 = sshll.u32 %s3553_s27, 12  ;;  %s298_s19 = scalar_lea.vmem [#allocation4], %s2838_s13 }
  0xa1   : > { %s3844_s28 = scalar_lea.hbm %s4201_s0, %s2929_s14  ;;  %s305_s12 = sshll.u32 %s298_s19, 4  ;;  %s3846_s12 = int_to_ptr.vmem [resolvable:$true] %s305_s12 }
  0xa2   : > { %p3850_p4 = pnand %p3182_p5, %p3819_p12  ;;  %s3854_s22 = scalar_lea.sflag [#allocation5], %s294_s20 }
  0xa3   : > { %s3433_s9 = scalar_lea.hbm %s3844_s28, 4096  ;;  %s3438_s18 = scalar_lea.hbm %s4201_s0, 8192 }
  0xa4   : > { %p3434_p10 = scmp.ne.s32.totalorder %s3844_s28, %s3433_s9  ;;  %p3435_p8 = pneg %p3850_p4 }
  0xa5   : > { %p3439_p11 = scmp.lt.u32.totalorder %s3844_s28, %s4201_s0  ;;  %p3440_p12 = scmp.lt.u32.totalorder %s3438_s18, %s3433_s9 }
  0xa6   : > { %p3436_p1 = pnand %p3435_p8, %p3434_p10  ;;  %p3442_p0 = scmp.lt.u32.totalorder %s3433_s9, %s3844_s28 }
  0xa7   : > { %p3441_p13 = por %p3440_p12, %p3439_p11 }
  0xa8   : > { %p3437_p3 = pneg %p3436_p1 }
  0xa9   : > { %p3443_p2 = por %p3442_p0, %p3441_p13 }
  0xab   : > { %p3444_p5 = pnand %p3443_p2, %p3437_p3 }
  0xad   : > { %3447 = shalt.err (!%p3444_p5)
}
  0xae   : > { %s3448_s20 = scalar_lea.vmem %s3846_s12, 4096  ;;  %s3577_s13 = smov [#allocation4]  }
  0xaf   : > { %p3449_p10 = scmp.ne.s32.totalorder %s3846_s12, %s3448_s20  ;;  %s3453_s14 = sshll.u32 %s3577_s13, 4  ;;  %s3454_s14 = int_to_ptr.vmem [resolvable:$false] %s3453_s14 }
  0xb0   : > { %s3455_s29 = scalar_lea.vmem %s3454_s14, 8192  ;;  %p3456_p7 = scmp.lt.s32.totalorder %s3846_s12, %s3454_s14 }
  0xb1   : > { %p3451_p1 = pnand %p3449_p10, %p3435_p8  ;;  %p3457_p11 = scmp.lt.s32.totalorder %s3455_s29, %s3448_s20 }
  0xb3   : > { %p3452_p9 = pneg %p3451_p1  ;;  %p3458_p12 = por %p3457_p11, %p3456_p7 }
  0xb5   : > { %p3459_p13 = pnand %p3458_p12, %p3452_p9 }
  0xb7   : > { %3462 = shalt.err (!%p3459_p13)
}
  0xb8   : > { %s4222_s9 = smov 128   ;;  %p4223_p8 = scmp.ne.s32.totalorder %s4213_s8, 0 }
  0xb9   : > { %3171 = dma.hbm_to_vmem [thread:$0]  (!%p3850_p4), %s3844_s28, 4096, %s3846_s12, %s3854_s22, %s4222_s9, %s4222_s9, %s3573_s23  }
  0xba   : > { %317 = sbr.rel (%p4223_p8) target bundleno = 961 (0x3c1), region = 48  ;;  %s3888_s18 = sand.u32 (!%p4223_p8), 1, %s3545_s25  }
  0xbb   : > { %s2842_s19 = sshll.u32 (!%p4223_p8), %s3888_s18, 8  ;;  %s320_s20 = scalar_lea.sflag (!%p4223_p8), [#allocation5], %s3888_s18 }
  0xbc   : > { %s3892_s13 = scalar_lea.vmem (!%p4223_p8), [#allocation4], %s2842_s19 }
  0xc1   : > { %3520 = dma.done.wait (%p3825_p6), %s320_s20, 4096  }
  0xc2   : > { %3522 = vsyncadd (%p3825_p6), %s320_s20, 4294963200  ;;  %p4224_p7 = scmp.eq.s32.totalorder %s3649_s30, 0 }
  0xc4   : > { %3524 = dma.done.wait (%p4224_p7), [#allocation8], 592   ;;  %p4225_p9 = pmov %p4224_p7 }
  0xc5   : > { %p4226_p4 = pmov %p4224_p7 }
  0xc6   : > { %3526 = vsyncadd (%p4225_p9), [#allocation8], 4294966704 }
  0xc7   : > { %3528 = dma.done.wait (%p4226_p4), [#allocation11], 1168   ;;  %p4227_p3 = pmov %p4226_p4 }
  0xc9   : > { %3530 = vsyncadd (%p4227_p3), [#allocation11], 4294966128  ;;  %p4228_p0 = pmov %p4227_p3 }
  0xcb   : > { %3532 = dma.done.wait (%p4228_p0), [#allocation14], 1168   ;;  %p4229_p2 = pmov %p4228_p0 }
  0xcc   : > { %s3119_s8 = smul.u32 56, %s3888_s18  ;;  %vm378_vm0 = vcmask 64512   ;;  %vm380_vm1 = vcmask 57344   ;;  %v3578_v0 = vmov 0.0   ;;  %v3947_v1 = vld [vmem:[#allocation9] ss:$0 sm:$0xff] }
  0xcd   : > { %3534 = vsyncadd (%p4229_p2), [#allocation14], 4294966128  ;;  %379 = vst.msk [vmem:[#allocation2] sm:$0xff] %vm378_vm0, %v3578_v0  ;;  %s3951_s23 = smov 0  }
  0xce   : > { %382 = vst.msk [vmem:[#allocation2 + $0x10] sm:$0xff] %vm378_vm0, %v3578_v0  ;;  %384 = vst.msk [vmem:[#allocation2 + $0x20] sm:$0xff] %vm378_vm0, %v3578_v0  ;;  %s3949_s22 = scalar_lea.vmem [#allocation16], %s3119_s8 }
  0xcf   : > { %386 = vst.msk [vmem:[#allocation2 + $0x30] sm:$0xff] %vm378_vm0, %v3578_v0  ;;  %388 = vst.msk [vmem:[#allocation2 + $0x40] sm:$0xff] %vm378_vm0, %v3578_v0 }
  0xd0   : > { %390 = vst.msk [vmem:[#allocation2 + $0x50] sm:$0xff] %vm378_vm0, %v3578_v0  ;;  %392 = vst.msk [vmem:[#allocation2 + $0x60] sm:$0xff] %vm378_vm0, %v3578_v0 }
  0xd1   : > { %394 = vst.msk [vmem:[#allocation2 + $0x70] sm:$0xff] %vm378_vm0, %v3578_v0  ;;  %396 = vst.msk [vmem:[#allocation2 + $0x80] sm:$0xff] %vm378_vm0, %v3578_v0 }
  0xd2   : > { %381 = vst.msk [vmem:[#allocation2 + $0x8] sm:$0x1] %vm380_vm1, %v3578_v0  ;;  %383 = vst.msk [vmem:[#allocation2 + $0x18] sm:$0x1] %vm380_vm1, %v3578_v0 }
  0xd3   : > { %385 = vst.msk [vmem:[#allocation2 + $0x28] sm:$0x1] %vm380_vm1, %v3578_v0  ;;  %387 = vst.msk [vmem:[#allocation2 + $0x38] sm:$0x1] %vm380_vm1, %v3578_v0 }
  0xd4   : > { %389 = vst.msk [vmem:[#allocation2 + $0x48] sm:$0x1] %vm380_vm1, %v3578_v0  ;;  %391 = vst.msk [vmem:[#allocation2 + $0x58] sm:$0x1] %vm380_vm1, %v3578_v0 }
  0xd5   : > { %393 = vst.msk [vmem:[#allocation2 + $0x68] sm:$0x1] %vm380_vm1, %v3578_v0  ;;  %395 = vst.msk [vmem:[#allocation2 + $0x78] sm:$0x1] %vm380_vm1, %v3578_v0 }
  0xd6   : > { %397 = vst.msk [vmem:[#allocation2 + $0x88] sm:$0x1] %vm380_vm1, %v3578_v0 }
  0xd7 LB: >> { %v414_v2 = vld [vmem:[#allocation7 + $0x4] sm:$0xf]  ;;  %vm419_vm2 = vcmask 1043456   ;;  %v3579_v3 = vmov 0.0   ;;  %v408_v4 = vld [vmem:[#allocation7] sm:$0xf]  ;;  %s3557_s23 = sphi %s3951_s23, %s404_s23  }
  0xd8   : >> { %2984 = vmatprep.subr.mxu0 %v3579_v3  ;;  %2989 = vmatprep.subr.mxu1 %v3579_v3  ;;  %vm3580_vm3 = vmmov 0   ;;  %s2849_s15 = sshll.u32 %s3557_s23, 3  ;;  %vm415_vm4 = vcmask 31744   ;;  %v571_v5 = vld [vmem:[#allocation7 + $0x8] sm:$0xf]  ;;  %s2881_s12 = sshll.u32 %s3557_s23, 4 }
  0xd9   : >> { %2985 = vmatpush3.msk.msra.mxu0 %vm419_vm2, %v414_v2  ;;  %2986 = vmatprep.mubr.msk.f32.mxu0 %vm3580_vm3, %v3579_v3  ;;  %s3962_s28 = scalar_lea.vmem %s3892_s13, %s2849_s15 [#allocation4]  ;;  %v654_v6 = vld [vmem:[#allocation7 + $0xc] sm:$0xf]  ;;  %v737_v11 = vld [vmem:[#allocation7 + $0x10] sm:$0xf]  ;;  %v817_v12 = vld [vmem:[#allocation7 + $0x14] sm:$0xf] }
  0xda   : >> { %2990 = vmatpush3.msk.msra.mxu1 %vm419_vm2, %v408_v4  ;;  %2991 = vmatprep.mubr.msk.f32.mxu1 %vm3580_vm3, %v3579_v3  ;;  %v2851_v7 = vld [vmem:[%s3962_s28 + $0x40] sm:$0x7f]  ;;  %v900_v15 = vld [vmem:[#allocation7 + $0x18] sm:$0xf]  ;;  %v983_v16 = vld [vmem:[#allocation7 + $0x1c] sm:$0xf] }
  0xdb   : >> { %2994 = vmatprep.subr.mxu0 %v3579_v3  ;;  %v407_v8 = vld [vmem:[%s3962_s28] sm:$0x7f]  ;;  %2999 = vmatprep.subr.mxu1 %v3579_v3  ;;  %v2870_v17 = vld [vmem:[%s3962_s28 + $0x8] sm:$0x7f]  ;;  %vm1150_vm5 = vcmask 63488   ;;  %s2702_s16 = scalar_lea.vmem [#allocation2], %s2881_s12 }
  0xdc   : >> { %2987 = vmatmul.mubr.msk.f32.vlgmr.msra.gmra.mrb[0].mxu0 %vm415_vm4, %v2851_v7  ;;  %2992 = vmatmul.mubr.msk.f32.vlgmr.msra.gmra.mrb[0].mxu1 %vm415_vm4, %v407_v8  ;;  %v569_v9 = vld [vmem:[%s3962_s28 + $0x1] sm:$0x7f]  ;;  %v2874_v18 = vld [vmem:[%s3962_s28 + $0x48] sm:$0x7f]  ;;  %s404_s23 = sadd.s32 1, %s3557_s23  }
  0xdd   : >> { %2995 = vmatpush3.msk.msra.mxu0 %vm419_vm2, %v571_v5  ;;  %3000 = vmatpush3.msk.msra.mxu1 %vm419_vm2, %v654_v6  ;;  %v2859_v10 = vld [vmem:[%s3962_s28 + $0x80] sm:$0x7f]  ;;  %v2877_v20 = vld [vmem:[%s3962_s28 + $0x9] sm:$0x7f]  ;;  %p401_p6 = scmp.ge.s32.totalorder %s404_s23, 7  }
  0xde   : >> { %2996 = vmatprep.mubr.msk.f32.mxu0 %vm3580_vm3, %v3579_v3  ;;  %3004 = vmatprep.subr.mxu0 %v3579_v3  ;;  %v2863_v13 = vld [vmem:[%s3962_s28 + $0xc0] sm:$0x7f]  ;;  %1152 = vst.msk [vmem:[#allocation3] sm:$0xff] (%p401_p6), %vm378_vm0, %v3578_v0  ;;  %1154 = vst.msk [vmem:[#allocation3 + $0x10] sm:$0xff] (%p401_p6), %vm378_vm0, %v3578_v0  ;;  %v4038_v48 = vld [vmem:[#allocation12] ss:$0 sm:$0xff] (%p401_p6) }
  0xdf   : >> { %3001 = vmatprep.mubr.msk.f32.mxu1 %vm3580_vm3, %v3579_v3  ;;  %3009 = vmatprep.subr.mxu1 %v3579_v3  ;;  %v2866_v14 = vld [vmem:[%s3962_s28 + $0x81] sm:$0x7f]  ;;  %1153 = vst.msk [vmem:[#allocation3 + $0x8] sm:$0x1] (%p401_p6), %vm380_vm1, %v3578_v0  ;;  %1155 = vst.msk [vmem:[#allocation3 + $0x18] sm:$0x1] (%p401_p6), %vm380_vm1, %v3578_v0 }
  0xe0   : >> { %2997 = vmatmul.mubr.msk.f32.vlgmr.msra.gmra.mrb[2].mxu0 %vm415_vm4, %v569_v9  ;;  %3002 = vmatmul.mubr.msk.f32.vlgmr.msra.gmra.mrb[2].mxu1 %vm415_vm4, %v2859_v10  ;;  %v1063_v19 = vld [vmem:[#allocation7 + $0x20] sm:$0xf]  ;;  %1156 = vst.msk [vmem:[#allocation3 + $0x20] sm:$0xff] (%p401_p6), %vm378_vm0, %v3578_v0  ;;  %1158 = vst.msk [vmem:[#allocation3 + $0x30] sm:$0xff] (%p401_p6), %vm378_vm0, %v3578_v0  ;;  %s4040_s14 = smov (%p401_p6), 0  }
  0xe1   : >> { %3005 = vmatpush3.msk.msra.mxu0 %vm419_vm2, %v737_v11  ;;  %3010 = vmatpush3.msk.msra.mxu1 %vm419_vm2, %v817_v12  ;;  %1157 = vst.msk [vmem:[#allocation3 + $0x28] sm:$0x1] (%p401_p6), %vm380_vm1, %v3578_v0  ;;  %1159 = vst.msk [vmem:[#allocation3 + $0x38] sm:$0x1] (%p401_p6), %vm380_vm1, %v3578_v0 }
  0xe2   : >> { %3006 = vmatprep.mubr.msk.f32.mxu0 %vm3580_vm3, %v3579_v3  ;;  %3014 = vmatprep.subr.mxu0 %v3579_v3  ;;  %1160 = vst.msk [vmem:[#allocation3 + $0x40] sm:$0xff] (%p401_p6), %vm378_vm0, %v3578_v0  ;;  %1162 = vst.msk [vmem:[#allocation3 + $0x50] sm:$0xff] (%p401_p6), %vm378_vm0, %v3578_v0 }
  0xe3   : >> { %3011 = vmatprep.mubr.msk.f32.mxu1 %vm3580_vm3, %v3579_v3  ;;  %3019 = vmatprep.subr.mxu1 %v3579_v3  ;;  %1161 = vst.msk [vmem:[#allocation3 + $0x48] sm:$0x1] (%p401_p6), %vm380_vm1, %v3578_v0  ;;  %1163 = vst.msk [vmem:[#allocation3 + $0x58] sm:$0x1] (%p401_p6), %vm380_vm1, %v3578_v0 }
  0xe4   : >> { %3007 = vmatmul.mubr.msk.f32.vlgmr.msra.gmra.mrb[4].mxu0 %vm415_vm4, %v2863_v13  ;;  %3012 = vmatmul.mubr.msk.f32.vlgmr.msra.gmra.mrb[4].mxu1 %vm415_vm4, %v2866_v14  ;;  %1164 = vst.msk [vmem:[#allocation3 + $0x60] sm:$0xff] (%p401_p6), %vm378_vm0, %v3578_v0  ;;  %1166 = vst.msk [vmem:[#allocation3 + $0x70] sm:$0xff] (%p401_p6), %vm378_vm0, %v3578_v0 }
  0xe5   : >> { %3015 = vmatpush3.msk.msra.mxu0 %vm419_vm2, %v900_v15  ;;  %3020 = vmatpush3.msk.msra.mxu1 %vm419_vm2, %v983_v16  ;;  %1165 = vst.msk [vmem:[#allocation3 + $0x68] sm:$0x1] (%p401_p6), %vm380_vm1, %v3578_v0  ;;  %1167 = vst.msk [vmem:[#allocation3 + $0x78] sm:$0x1] (%p401_p6), %vm380_vm1, %v3578_v0 }
  0xe6   : >> { %3016 = vmatprep.mubr.msk.f32.mxu0 %vm3580_vm3, %v3579_v3  ;;  %3024 = vmatprep.subr.mxu0 %v3579_v3  ;;  %1168 = vst.msk [vmem:[#allocation3 + $0x80] sm:$0xff] (%p401_p6), %vm378_vm0, %v3578_v0 }
  0xe7   : >> { %3021 = vmatprep.mubr.msk.f32.mxu1 %vm3580_vm3, %v3579_v3  ;;  %1169 = vst.msk [vmem:[#allocation3 + $0x88] sm:$0x1] (%p401_p6), %vm380_vm1, %v3578_v0 }
  0xe8   : >> { %3017 = vmatmul.mubr.msk.f32.vlgmr.msra.gmra.mrb[6].mxu0 %vm415_vm4, %v2870_v17  ;;  %3022 = vmatmul.mubr.msk.f32.vlgmr.msra.gmra.mrb[6].mxu1 %vm415_vm4, %v2874_v18 }
  0xe9   : >> { %3025 = vmatpush3.msk.msra.mxu0 %vm419_vm2, %v1063_v19  ;;  %3026 = vmatprep.mubr.msk.f32.mxu0 %vm3580_vm3, %v3579_v3 }
  0xec   : >> { %3027 = vmatmul.mubr.msk.f32.vlgmr.msra.gmra.mrb[8].mxu0 %vm415_vm4, %v2877_v20 }
 0x1af   : >> { %v489_v21 = vpop.f32.mrb[0].mxu0  ;;  %v565_v22 = vpop.f32.mrb[0].mxu1 }
 0x1b0   : >> { %v566_v23 = vadd.f32 %v565_v22, %v489_v21  ;;  %v2988_v24 = vpop.f32.mrb[1].mxu0  ;;  %v2993_v25 = vpop.f32.mrb[1].mxu1 }
 0x1b3   : >> { %v644_v26 = vpop.f32.mrb[2].mxu0  ;;  %v727_v27 = vpop.f32.mrb[2].mxu1 }
 0x1b4   : >> { %v648_v28 = vadd.f32 %v644_v26, %v566_v23  ;;  %v2998_v29 = vpop.f32.mrb[3].mxu0  ;;  %v3003_v30 = vpop.f32.mrb[3].mxu1 }
 0x1b6   : >> { %v731_v31 = vadd.f32 %v727_v27, %v648_v28 }
 0x1b7   : >> { %v810_v32 = vpop.f32.mrb[4].mxu0  ;;  %v890_v33 = vpop.f32.mrb[4].mxu1 }
 0x1b8   : >> { %v814_v34 = vadd.f32 %v810_v32, %v731_v31  ;;  %v3008_v35 = vpop.f32.mrb[5].mxu0  ;;  %v3013_v36 = vpop.f32.mrb[5].mxu1 }
 0x1ba   : >> { %v894_v37 = vadd.f32 %v890_v33, %v814_v34 }
 0x1bb   : >> { %v973_v38 = vpop.f32.mrb[6].mxu0  ;;  %v1056_v39 = vpop.f32.mrb[6].mxu1 }
 0x1bc   : >> { %v977_v40 = vadd.f32 %v973_v38, %v894_v37  ;;  %v3018_v41 = vpop.f32.mrb[7].mxu0  ;;  %v3023_v42 = vpop.f32.mrb[7].mxu1 }
 0x1be   : >> { %v1060_v43 = vadd.f32 %v1056_v39, %v977_v40  ;;  %403 = sbr.rel (!%p401_p6) target bundleno = 215 (0xd7), region = 178 }
 0x1bf   : >> { %v1136_v44 = vpop.f32.mrb[8].mxu0 }
 0x1c0   : >> { %v1140_v45 = vadd.f32 %v1136_v44, %v1060_v43  ;;  %v3028_v46 = vpop.f32.mrb[9].mxu0 }
 0x1c2   : >> { %v1147_v47 = vadd.f32 %v3947_v1, %v1140_v45 }
 0x1c4   : >> { %2882 = vst.msk [vmem:[%s2702_s16 + $0x11] sm:$0x7f] %vm1150_vm5, %v1147_v47 }
 0x1c5 LB: >> { %v1187_v49 = vld [vmem:[#allocation10 + $0x8] sm:$0xff]  ;;  %v1182_v50 = vld [vmem:[#allocation10] sm:$0xff]  ;;  %v3581_v51 = vmov 0.0   ;;  %vm3582_vm6 = vmmov 0   ;;  %s2883_s29 = sshll.u32 %s3561_s14, 4  ;;  %v1338_v0 = vld [vmem:[#allocation10 + $0x10] sm:$0xff]  ;;  %s3561_s14 = sphi %s4040_s14, %s1176_s14  }
 0x1c6   : >> { %3029 = vmatprep.subr.mxu0 %v3581_v51  ;;  %3034 = vmatprep.subr.mxu1 %v3581_v51  ;;  %s4055_s9 = scalar_lea.vmem [#allocation2], %s2883_s29  ;;  %v1420_v1 = vld [vmem:[#allocation10 + $0x18] sm:$0xff]  ;;  %v1499_v8 = vld [vmem:[#allocation10 + $0x20] sm:$0xff]  ;;  %v1578_v9 = vld [vmem:[#allocation10 + $0x28] sm:$0xff]  ;;  %s2713_s19 = scalar_lea.vmem [#allocation3], %s2883_s29 }
 0x1c7   : >> { %3030 = vmatpush3.msra.mxu0 %v1187_v49  ;;  %3031 = vmatprep.mubr.msk.f32.mxu0 %vm3582_vm6, %v3581_v51  ;;  %v1660_v15 = vld [vmem:[#allocation10 + $0x30] sm:$0xff]  ;;  %v1739_v16 = vld [vmem:[#allocation10 + $0x38] sm:$0xff]  ;;  %v1818_v20 = vld [vmem:[#allocation10 + $0x40] sm:$0xff]  ;;  %s1176_s14 = sadd.s32 1, %s3561_s14  }
 0x1c8   : >> { %3035 = vmatpush3.msra.mxu1 %v1182_v50  ;;  %3036 = vmatprep.mubr.msk.f32.mxu1 %vm3582_vm6, %v3581_v51  ;;  %p1173_p5 = scmp.ge.s32.totalorder %s1176_s14, 7  }
 0x1c9   : >> { %3039 = vmatprep.subr.mxu0 %v3581_v51  ;;  %3044 = vmatprep.subr.mxu1 %v3581_v51  ;;  %s4104_s20 = smov (%p1173_p5), 0  }
 0x1cb   : >> { %v1183_v52 = vld [vmem:[%s4055_s9 + $0x1] sm:$0x7f]  ;;  %v2888_v58 = vld [vmem:[%s4055_s9 + $0x10] sm:$0x7f] }
 0x1cc   : >> { %v1179_v53 = vld [vmem:[%s4055_s9] sm:$0x7f]  ;;  %v1184_v55 = vmax.f32 %v1183_v52, 0.0  ;;  %v1417_v59 = vmax.f32 %v2888_v58, 0.0  ;;  %v2890_v60 = vld [vmem:[%s4055_s9 + $0x11] sm:$0x7f] }
 0x1cd   : >> { %v1334_v54 = vld [vmem:[%s4055_s9 + $0x2] sm:$0x7f]  ;;  %v1180_v56 = vmax.f32 %v1179_v53, 0.0  ;;  %v2892_v61 = vld [vmem:[%s4055_s9 + $0x12] sm:$0x7f]  ;;  %v1496_v4 = vmax.f32 %v2890_v60, 0.0 }
 0x1ce   : >> { %v1335_v57 = vmax.f32 %v1334_v54, 0.0  ;;  %v1185_v62 = vmin.f32 %v1184_v55, 6.0  ;;  %v1418_v3 = vmin.f32 %v1417_v59, 6.0  ;;  %v1575_v5 = vmax.f32 %v2892_v61, 0.0  ;;  %v2895_v6 = vld [vmem:[%s4055_s9 + $0x20] sm:$0x7f] }
 0x1cf   : >> { %v1181_v63 = vmin.f32 %v1180_v56, 6.0  ;;  %v2897_v7 = vld [vmem:[%s4055_s9 + $0x21] sm:$0x7f]  ;;  %v1497_v10 = vmin.f32 %v1496_v4, 6.0  ;;  %v1657_v12 = vmax.f32 %v2895_v6, 0.0 }
 0x1d0   : >> { %3032 = vmatmul.mubr.msk.f32.vlgmr.msra.gmra.mrb[0].mxu0 %vm378_vm0, %v1185_v62  ;;  %v1336_v2 = vmin.f32 %v1335_v57, 6.0  ;;  %v1576_v11 = vmin.f32 %v1575_v5, 6.0  ;;  %v1736_v13 = vmax.f32 %v2897_v7, 0.0  ;;  %v2899_v14 = vld [vmem:[%s4055_s9 + $0x22] sm:$0x7f] }
 0x1d1   : >> { %3037 = vmatmul.mubr.msk.f32.vlgmr.msra.gmra.mrb[0].mxu1 %vm378_vm0, %v1181_v63  ;;  %3040 = vmatpush3.msra.mxu0 %v1338_v0  ;;  %v1658_v17 = vmin.f32 %v1657_v12, 6.0  ;;  %v1815_v19 = vmax.f32 %v2899_v14, 0.0  ;;  %v4102_v52 = vld [vmem:[#allocation15] ss:$0 sm:$0xff] (%p1173_p5) }
 0x1d2   : >> { %3045 = vmatpush3.msra.mxu1 %v1420_v1  ;;  %3041 = vmatprep.mubr.msk.f32.mxu0 %vm3582_vm6, %v3581_v51  ;;  %v1737_v18 = vmin.f32 %v1736_v13, 6.0 }
 0x1d3   : >> { %3049 = vmatprep.subr.mxu0 %v3581_v51  ;;  %3046 = vmatprep.mubr.msk.f32.mxu1 %vm3582_vm6, %v3581_v51  ;;  %v1816_v21 = vmin.f32 %v1815_v19, 6.0 }
 0x1d4   : >> { %3054 = vmatprep.subr.mxu1 %v3581_v51  ;;  %3042 = vmatmul.mubr.msk.f32.vlgmr.msra.gmra.mrb[2].mxu0 %vm378_vm0, %v1336_v2 }
 0x1d5   : >> { %3047 = vmatmul.mubr.msk.f32.vlgmr.msra.gmra.mrb[2].mxu1 %vm378_vm0, %v1418_v3  ;;  %3050 = vmatpush3.msra.mxu0 %v1499_v8 }
 0x1d6   : >> { %3055 = vmatpush3.msra.mxu1 %v1578_v9  ;;  %3051 = vmatprep.mubr.msk.f32.mxu0 %vm3582_vm6, %v3581_v51 }
 0x1d7   : >> { %3059 = vmatprep.subr.mxu0 %v3581_v51  ;;  %3056 = vmatprep.mubr.msk.f32.mxu1 %vm3582_vm6, %v3581_v51 }
 0x1d8   : >> { %3064 = vmatprep.subr.mxu1 %v3581_v51  ;;  %3052 = vmatmul.mubr.msk.f32.vlgmr.msra.gmra.mrb[4].mxu0 %vm378_vm0, %v1497_v10 }
 0x1d9   : >> { %3057 = vmatmul.mubr.msk.f32.vlgmr.msra.gmra.mrb[4].mxu1 %vm378_vm0, %v1576_v11  ;;  %3060 = vmatpush3.msra.mxu0 %v1660_v15 }
 0x1da   : >> { %3065 = vmatpush3.msra.mxu1 %v1739_v16  ;;  %3061 = vmatprep.mubr.msk.f32.mxu0 %vm3582_vm6, %v3581_v51 }
 0x1db   : >> { %3069 = vmatprep.subr.mxu0 %v3581_v51  ;;  %3066 = vmatprep.mubr.msk.f32.mxu1 %vm3582_vm6, %v3581_v51 }
 0x1dc   : >> { %3062 = vmatmul.mubr.msk.f32.vlgmr.msra.gmra.mrb[6].mxu0 %vm378_vm0, %v1658_v17 }
 0x1dd   : >> { %3067 = vmatmul.mubr.msk.f32.vlgmr.msra.gmra.mrb[6].mxu1 %vm378_vm0, %v1737_v18  ;;  %3070 = vmatpush3.msra.mxu0 %v1818_v20 }
 0x1de   : >> { %3071 = vmatprep.mubr.msk.f32.mxu0 %vm3582_vm6, %v3581_v51 }
 0x1e0   : >> { %3072 = vmatmul.mubr.msk.f32.vlgmr.msra.gmra.mrb[8].mxu0 %vm378_vm0, %v1816_v21 }
 0x2a3   : >> { %v1257_v22 = vpop.f32.mrb[0].mxu0 }
 0x2a4   : >> { %v1330_v23 = vpop.f32.mrb[0].mxu1  ;;  %v3033_v25 = vpop.f32.mrb[1].mxu0 }
 0x2a5   : >> { %v1331_v24 = vadd.f32 %v1330_v23, %v1257_v22  ;;  %v3038_v26 = vpop.f32.mrb[1].mxu1 }
 0x2a7   : >> { %v1408_v27 = vpop.f32.mrb[2].mxu0 }
 0x2a8   : >> { %v1490_v28 = vpop.f32.mrb[2].mxu1  ;;  %v1412_v29 = vadd.f32 %v1408_v27, %v1331_v24  ;;  %v3043_v30 = vpop.f32.mrb[3].mxu0 }
 0x2a9   : >> { %v3048_v31 = vpop.f32.mrb[3].mxu1 }
 0x2aa   : >> { %v1494_v32 = vadd.f32 %v1490_v28, %v1412_v29 }
 0x2ab   : >> { %v1569_v33 = vpop.f32.mrb[4].mxu0 }
 0x2ac   : >> { %v1648_v34 = vpop.f32.mrb[4].mxu1  ;;  %v1573_v35 = vadd.f32 %v1569_v33, %v1494_v32  ;;  %v3053_v36 = vpop.f32.mrb[5].mxu0 }
 0x2ad   : >> { %v3058_v37 = vpop.f32.mrb[5].mxu1 }
 0x2ae   : >> { %v1652_v38 = vadd.f32 %v1648_v34, %v1573_v35 }
 0x2af   : >> { %v1730_v39 = vpop.f32.mrb[6].mxu0 }
 0x2b0   : >> { %v1809_v40 = vpop.f32.mrb[6].mxu1  ;;  %v1734_v41 = vadd.f32 %v1730_v39, %v1652_v38  ;;  %v3063_v42 = vpop.f32.mrb[7].mxu0 }
 0x2b1   : >> { %v3068_v43 = vpop.f32.mrb[7].mxu1 }
 0x2b2   : >> { %v1813_v44 = vadd.f32 %v1809_v40, %v1734_v41 }
 0x2b3   : >> { %v1888_v45 = vpop.f32.mrb[8].mxu0 }
 0x2b4   : >> { %v1892_v46 = vadd.f32 %v1888_v45, %v1813_v44  ;;  %v3073_v47 = vpop.f32.mrb[9].mxu0 }
 0x2b6   : >> { %v1899_v49 = vadd.f32 %v4038_v48, %v1892_v46  ;;  %1175 = sbr.rel (!%p1173_p5) target bundleno = 453 (0x1c5), region = 189 }
 0x2b8   : >> { %v1900_v50 = vmax.f32 %v1899_v49, 0.0 }
 0x2ba   : >> { %v1901_v51 = vmin.f32 %v1900_v50, 6.0 }
 0x2bc   : >> { %2903 = vst.msk [vmem:[%s2713_s19 + $0x11] sm:$0x7f] %vm1150_vm5, %v1901_v51 }
 0x2bd LB: >> { %v1918_v53 = vld [vmem:[#allocation13 + $0x8] sm:$0xff]  ;;  %v1915_v54 = vld [vmem:[#allocation13] sm:$0xff]  ;;  %v3583_v55 = vmov 0.0   ;;  %vm3584_vm7 = vmmov 0   ;;  %s2904_s13 = sshll.u32 %s3565_s20, 4  ;;  %v2067_v48 = vld [vmem:[#allocation13 + $0x10] sm:$0xff]  ;;  %s3565_s20 = sphi %s4104_s20, %s1911_s20  }
 0x2be   : >> { %3074 = vmatprep.subr.mxu0 %v3583_v55  ;;  %3079 = vmatprep.subr.mxu1 %v3583_v55  ;;  %v2147_v56 = vld [vmem:[#allocation13 + $0x18] sm:$0xff]  ;;  %s4114_s8 = scalar_lea.vmem [#allocation3], %s2904_s13  ;;  %v2224_v61 = vld [vmem:[#allocation13 + $0x20] sm:$0xff]  ;;  %v2301_v62 = vld [vmem:[#allocation13 + $0x28] sm:$0xff]  ;;  %s2724_s23 = scalar_lea.vmem [#allocation2], %s2904_s13 }
 0x2bf   : >> { %3075 = vmatpush3.msra.mxu0 %v1918_v53  ;;  %3076 = vmatprep.mubr.msk.f32.mxu0 %vm3584_vm7, %v3583_v55  ;;  %v2381_v1 = vld [vmem:[#allocation13 + $0x30] sm:$0xff]  ;;  %v2458_v2 = vld [vmem:[#allocation13 + $0x38] sm:$0xff]  ;;  %v2535_v5 = vld [vmem:[#allocation13 + $0x40] sm:$0xff]  ;;  %s2925_s15 = sshll.u32 %s3565_s20, 3  ;;  %s1911_s20 = sadd.s32 1, %s3565_s20  }
 0x2c0   : >> { %3080 = vmatpush3.msra.mxu1 %v1915_v54  ;;  %3081 = vmatprep.mubr.msk.f32.mxu1 %vm3584_vm7, %v3583_v55  ;;  %v2924_v33 = vld [vmem:[%s2724_s23 + $0x11] sm:$0x7f]  ;;  %s2623_s28 = scalar_lea.vmem %s3949_s22, %s2925_s15 [#allocation16]  ;;  %p1908_p10 = scmp.ge.s32.totalorder %s1911_s20, 7  }
 0x2c1   : >> { %3084 = vmatprep.subr.mxu0 %v3583_v55  ;;  %3089 = vmatprep.subr.mxu1 %v3583_v55  ;;  %s3120_s12 = smul.u32 (%p1908_p10), 896, %s3649_s30  ;;  %s2640_s16 = sshll.u32 (%p1908_p10), %s3949_s22, 4  ;;  %s4157_s16 = int_to_ptr.vmem [resolvable:$true] %s2640_s16 }
 0x2c2   : > { %s2627_s19 = scalar_lea.sflag (%p1908_p10), [#allocation6], %s3888_s18  ;;  %s3463_s13 = scalar_lea.vmem (%p1908_p10), %s4157_s16, 896 }
 0x2c3   : >> { %v1916_v57 = vld [vmem:[%s4114_s8 + $0x1] sm:$0x7f]  ;;  %v2909_v60 = vld [vmem:[%s4114_s8 + $0x10] sm:$0x7f]  ;;  %s4155_s9 = scalar_lea.hbm (%p1908_p10), %s4208_s7, %s3120_s12  ;;  %p3464_p1 = scmp.ne.s32.totalorder (%p1908_p10), %s4157_s16, %s3463_s13 }
 0x2c4   : >> { %v1914_v58 = vld [vmem:[%s4114_s8] sm:$0x7f]  ;;  %3077 = vmatmul.mubr.msk.f32.vlgmr.msra.gmra.mrb[0].mxu0 %vm378_vm0, %v1916_v57  ;;  %v2911_v63 = vld [vmem:[%s4114_s8 + $0x11] sm:$0x7f]  ;;  %p4230_p11 = scmp.ne.s32.totalorder (%p1908_p10), %s4219_s21, 0  ;;  %s3585_s20 = smov (%p1908_p10), [#allocation16]  }
 0x2c5   : >> { %3082 = vmatmul.mubr.msk.f32.vlgmr.msra.gmra.mrb[0].mxu1 %vm378_vm0, %v1914_v58  ;;  %3085 = vmatpush3.msra.mxu0 %v2067_v48  ;;  %v2065_v59 = vld [vmem:[%s4114_s8 + $0x2] sm:$0x7f]  ;;  %v2913_v0 = vld [vmem:[%s4114_s8 + $0x12] sm:$0x7f] }
 0x2c6   : >> { %3090 = vmatpush3.msra.mxu1 %v2147_v56  ;;  %3086 = vmatprep.mubr.msk.f32.mxu0 %vm3584_vm7, %v3583_v55  ;;  %v2916_v3 = vld [vmem:[%s4114_s8 + $0x20] sm:$0x7f]  ;;  %p3465_p12 = pnand (%p1908_p10), %p3464_p1, %p4230_p11 }
 0x2c7   : >> { %3094 = vmatprep.subr.mxu0 %v3583_v55  ;;  %3091 = vmatprep.mubr.msk.f32.mxu1 %vm3584_vm7, %v3583_v55  ;;  %v2918_v4 = vld [vmem:[%s4114_s8 + $0x21] sm:$0x7f] }
 0x2c8   : >> { %3099 = vmatprep.subr.mxu1 %v3583_v55  ;;  %3087 = vmatmul.mubr.msk.f32.vlgmr.msra.gmra.mrb[2].mxu0 %vm378_vm0, %v2065_v59  ;;  %v2920_v6 = vld [vmem:[%s4114_s8 + $0x22] sm:$0x7f]  ;;  %p3466_p13 = pneg (%p1908_p10), %p3465_p12  ;;  %s3467_s8 = sshll.u32 (%p1908_p10), %s3585_s20, 4  ;;  %s3468_s8 = int_to_ptr.vmem [resolvable:$false] %s3467_s8 }
 0x2c9   : >> { %3092 = vmatmul.mubr.msk.f32.vlgmr.msra.gmra.mrb[2].mxu1 %vm378_vm0, %v2909_v60  ;;  %3095 = vmatpush3.msra.mxu0 %v2224_v61  ;;  %s3469_s30 = scalar_lea.vmem (%p1908_p10), %s3468_s8, 1792  ;;  %p3470_p8 = scmp.lt.s32.totalorder (%p1908_p10), %s4157_s16, %s3468_s8 }
 0x2ca   : >> { %3100 = vmatpush3.msra.mxu1 %v2301_v62  ;;  %3096 = vmatprep.mubr.msk.f32.mxu0 %vm3584_vm7, %v3583_v55  ;;  %p3471_p7 = scmp.lt.s32.totalorder (%p1908_p10), %s3469_s30, %s3463_s13 }
 0x2cb   : >> { %3104 = vmatprep.subr.mxu0 %v3583_v55  ;;  %3101 = vmatprep.mubr.msk.f32.mxu1 %vm3584_vm7, %v3583_v55 }
 0x2cc   : >> { %3109 = vmatprep.subr.mxu1 %v3583_v55  ;;  %3097 = vmatmul.mubr.msk.f32.vlgmr.msra.gmra.mrb[4].mxu0 %vm378_vm0, %v2911_v63  ;;  %p3472_p9 = por (%p1908_p10), %p3471_p7, %p3470_p8 }
 0x2cd   : >> { %3102 = vmatmul.mubr.msk.f32.vlgmr.msra.gmra.mrb[4].mxu1 %vm378_vm0, %v2913_v0  ;;  %3105 = vmatpush3.msra.mxu0 %v2381_v1 }
 0x2ce   : >> { %3110 = vmatpush3.msra.mxu1 %v2458_v2  ;;  %3106 = vmatprep.mubr.msk.f32.mxu0 %vm3584_vm7, %v3583_v55  ;;  %p3473_p4 = pnand (%p1908_p10), %p3472_p9, %p3466_p13 }
 0x2cf   : >> { %3114 = vmatprep.subr.mxu0 %v3583_v55  ;;  %3111 = vmatprep.mubr.msk.f32.mxu1 %vm3584_vm7, %v3583_v55 }
 0x2d0   : >> { %3107 = vmatmul.mubr.msk.f32.vlgmr.msra.gmra.mrb[6].mxu0 %vm378_vm0, %v2916_v3 }
 0x2d1   : >> { %3112 = vmatmul.mubr.msk.f32.vlgmr.msra.gmra.mrb[6].mxu1 %vm378_vm0, %v2918_v4  ;;  %3115 = vmatpush3.msra.mxu0 %v2535_v5 }
 0x2d2   : >> { %3116 = vmatprep.mubr.msk.f32.mxu0 %vm3584_vm7, %v3583_v55 }
 0x2d4   : >> { %3117 = vmatmul.mubr.msk.f32.vlgmr.msra.gmra.mrb[8].mxu0 %vm378_vm0, %v2920_v6 }
 0x397   : >> { %v1988_v7 = vpop.f32.mrb[0].mxu0 }
 0x398   : >> { %v2061_v8 = vpop.f32.mrb[0].mxu1  ;;  %v3078_v10 = vpop.f32.mrb[1].mxu0 }
 0x399   : >> { %v2062_v9 = vadd.f32 %v2061_v8, %v1988_v7  ;;  %v3083_v11 = vpop.f32.mrb[1].mxu1 }
 0x39b   : >> { %v2137_v12 = vpop.f32.mrb[2].mxu0 }
 0x39c   : >> { %v2217_v13 = vpop.f32.mrb[2].mxu1  ;;  %v2141_v14 = vadd.f32 %v2137_v12, %v2062_v9  ;;  %v3088_v15 = vpop.f32.mrb[3].mxu0 }
 0x39d   : >> { %v3093_v16 = vpop.f32.mrb[3].mxu1 }
 0x39e   : >> { %v2221_v17 = vadd.f32 %v2217_v13, %v2141_v14 }
 0x39f   : >> { %v2294_v18 = vpop.f32.mrb[4].mxu0 }
 0x3a0   : >> { %v2371_v19 = vpop.f32.mrb[4].mxu1  ;;  %v2298_v20 = vadd.f32 %v2294_v18, %v2221_v17  ;;  %v3098_v21 = vpop.f32.mrb[5].mxu0 }
 0x3a1   : >> { %v3103_v22 = vpop.f32.mrb[5].mxu1 }
 0x3a2   : >> { %v2375_v23 = vadd.f32 %v2371_v19, %v2298_v20 }
 0x3a3   : >> { %v2451_v24 = vpop.f32.mrb[6].mxu0 }
 0x3a4   : >> { %v2528_v25 = vpop.f32.mrb[6].mxu1  ;;  %v2455_v26 = vadd.f32 %v2451_v24, %v2375_v23  ;;  %v3108_v27 = vpop.f32.mrb[7].mxu0 }
 0x3a5   : >> { %v3113_v28 = vpop.f32.mrb[7].mxu1 }
 0x3a6   : >> { %v2532_v29 = vadd.f32 %v2528_v25, %v2455_v26 }
 0x3a7   : >> { %v2605_v30 = vpop.f32.mrb[8].mxu0 }
 0x3a8   : >> { %v2609_v31 = vadd.f32 %v2605_v30, %v2532_v29  ;;  %v3118_v32 = vpop.f32.mrb[9].mxu0 }
 0x3aa   : >> { %v2616_v34 = vadd.f32 %v4102_v52, %v2609_v31 }
 0x3ac   : >> { %v2619_v35 = vadd.f32 %v2924_v33, %v2616_v34  ;;  %1910 = sbr.rel (!%p1908_p10) target bundleno = 701 (0x2bd), region = 200 }
 0x3ae   : >> { %v2620_v36 = vmax.f32 %v2619_v35, 0.0 }
 0x3b0   : >> { %v2621_v37 = vmin.f32 %v2620_v36, 6.0 }
 0x3b2   : >> { %2625 = vst.msk [vmem:[%s2623_s28] sm:$0x7f] %vm1150_vm5, %v2621_v37 }
 0x3b3   : > { %3476 = shalt.err (!%p3473_p4)
}
 0x3b4   : > { %s3477_s22 = scalar_lea.hbm %s4155_s9, 896  ;;  %s3481_s28 = scalar_lea.hbm %s4208_s7, 1792 }
 0x3b5   : > { %p3478_p3 = scmp.ne.s32.totalorder %s4155_s9, %s3477_s22  ;;  %p3482_p6 = scmp.lt.u32.totalorder %s4155_s9, %s4208_s7 }
 0x3b6   : > { %p3483_p5 = scmp.lt.u32.totalorder %s3481_s28, %s3477_s22  ;;  %p3485_p1 = scmp.lt.u32.totalorder %s3477_s22, %s4155_s9 }
 0x3b7   : > { %p3479_p0 = pnand %p3478_p3, %p4230_p11 }
 0x3b8   : > { %p3484_p10 = por %p3483_p5, %p3482_p6 }
 0x3b9   : > { %p3480_p2 = pneg %p3479_p0 }
 0x3ba   : > { %p3486_p12 = por %p3485_p1, %p3484_p10 }
 0x3bc   : > { %p3487_p13 = pnand %p3486_p12, %p3480_p2 }
 0x3be   : > { %3490 = shalt.err (!%p3487_p13)
}
 0x3bf   : > { %s3586_s29 = smov 128   ;;  %s3587_s13 = smov 8  }
 0x3c0   : > { %3147 = dma.vmem_to_hbm [thread:$0]  (%p4230_p11), %s4157_s16, 896, %s4155_s9, %s2627_s19, %s3586_s29, %s3586_s29, %s3587_s13  }
 0x3c1 PF: > { %s2655_s20 = sand.u32 1, %s3541_s24   ;;  %p4231_p8 = scmp.ne.s32.totalorder %s4220_s10, 0 }
 0x3c2   : > { %p4232_p7 = scmp.ge.s32.totalorder %s3553_s27, 2  ;;  %s2656_s8 = scalar_lea.sflag [#allocation6], %s2655_s20 }
 0x3c4   : > { %p3173_p9 = pnand %p4232_p7, %p4231_p8 }
 0x3c6   : > { %3536 = dma.done.wait (!%p3173_p9), %s2656_s8, 896  }
 0x3c7   : > { %3538 = vsyncadd (!%p3173_p9), %s2656_s8, 4294966400  ;;  %p23_p4 = scmp.ge.s32.totalorder %s3806_s11, 4   ;;  %s4233_s24 = smov %s3545_s25 }
 0x3c8   : > { %s4234_s25 = smov %s3549_s26  ;;  %s4235_s26 = smov %s3817_s17 }
 0x3c9   : > { %s4236_s27 = smov %s3806_s11  ;;  %25 = sbr.rel (!%p23_p4) target bundleno = 8 (0x8), region = 211 }
 0x3d0   :  { %2661 = vsyncpa [#allocation5], 1 }
 0x3d1   :  { %2663 = vsyncpa [#allocation5 + $0x1], 1 }
 0x3d2   :  { %2664 = vsyncpa [#allocation8], 1 }
 0x3d3   :  { %2665 = vsyncpa [#allocation11], 1 }
 0x3d4   :  { %2666 = vsyncpa [#allocation14], 1 }
 0x3d5   :  { %2667 = vsyncpa [#allocation6], 1 }
 0x3d6   :  { %2669 = vsyncpa [#allocation6 + $0x1], 1 }

</bundles_post_ra>
